<compile_context>
chip_gen: v5e
topology: v5e:2x2
jax: 0.10.0
libtpu: 0.0.40
codegen_flags: <defaults>
</compile_context>

<pallas_src>
import functools

import jax
import jax.numpy as jnp
from jax import lax
from jax.experimental import pallas as pl
from jax.experimental.pallas import tpu as pltpu

LANES = 128                                     # padded channel width between kernels
POOL_TAPS = ((0, 0), (0, 1), (1, 0), (1, 1))    # 2x2 max-pool window offsets


# ---------------------------------------------------------------------------
# Pallas kernels
# ---------------------------------------------------------------------------

def _conv_pool_kernel(p_ref, w_ref, b_ref, o_ref):
    """Fused conv + bias + ReLU + 2x2 max-pool.

    p: (M, K)    patches of the pooled-output receptive field (6x6 window, stride 2)
    w: (K, 4*N)  conv filter replicated once per pool tap (4 lane groups of N=128)
    b: (1, 4*N)
    o: (M, N)    pooled output, channels zero-padded to 128 lanes (lane-dense store)
    """
    y = jnp.dot(p_ref[...], w_ref[...], preferred_element_type=jnp.float32)
    y = jnp.maximum(y + b_ref[...], 0.0)                    # bias + ReLU (VPU)
    n = o_ref.shape[-1]
    # 2x2 max-pool == max over the 4 lane groups (whole-vreg slices, no reshapes).
    o_ref[...] = jnp.maximum(
        jnp.maximum(y[:, 0:n], y[:, n:2 * n]),
        jnp.maximum(y[:, 2 * n:3 * n], y[:, 3 * n:4 * n]),
    ).astype(o_ref.dtype)


def _mlp_kernel(x_ref, w1_ref, b1_ref, w2_ref, b2_ref, w3_ref, b3_ref, o_ref):
    """fc1+ReLU -> fc2+ReLU -> fc3+ReLU, all resident in VMEM (weights are tiny)."""
    h = jnp.dot(x_ref[...], w1_ref[...], preferred_element_type=jnp.float32)
    h = jnp.maximum(h + b1_ref[...], 0.0)
    h = jnp.dot(h, w2_ref[...], preferred_element_type=jnp.float32)
    h = jnp.maximum(h + b2_ref[...], 0.0)
    h = jnp.dot(h, w3_ref[...], preferred_element_type=jnp.float32)
    h = jnp.maximum(h + b3_ref[...], 0.0)      # reference module ReLUs fc3 as well
    o_ref[...] = h.astype(o_ref.dtype)


def _vmem_call(kernel, out_shape, n_in):
    return pl.pallas_call(
        kernel,
        out_shape=out_shape,
        in_specs=[pl.BlockSpec(memory_space=pltpu.MemorySpace.VMEM)] * n_in,
        out_specs=pl.BlockSpec(memory_space=pltpu.MemorySpace.VMEM),
    )


def conv_pool_stage(patches, w_big, b_big):
    m = patches.shape[0]
    return _vmem_call(_conv_pool_kernel,
                      jax.ShapeDtypeStruct((m, LANES), jnp.float32), 3)(
                          patches, w_big, b_big)


def mlp_stage(feats, wf1, bf1, wf2, bf2, wf3, bf3):
    m = feats.shape[0]
    return _vmem_call(_mlp_kernel,
                      jax.ShapeDtypeStruct((m, LANES), jnp.float32), 7)(
                          feats, wf1, bf1, wf2, bf2, wf3, bf3)


# ---------------------------------------------------------------------------
# Per-forward XLA glue (layout only, tiny tensors)
# ---------------------------------------------------------------------------

def _pool_receptive_patches(x_nhwc, out_hw):
    """6x6 / stride-2 windows: receptive field of one 2x2-pooled output of a 5x5 conv.

    Returns (B*out_hw*out_hw, 36*C) with feature order (ih, iw, c).
    """
    b, _, _, c = x_nhwc.shape
    win = 6
    cols = []
    for ih in range(win):
        for iw in range(win):
            cols.append(x_nhwc[:, ih:ih + 2 * out_hw:2, iw:iw + 2 * out_hw:2, :])
    p = jnp.concatenate(cols, axis=-1)                # (B, out_hw, out_hw, 36*C)
    return p.reshape(b * out_hw * out_hw, win * win * c)


# ---------------------------------------------------------------------------
# Parameters: PyTorch layout + one-time preprocessing
# ---------------------------------------------------------------------------

def init_params(key, classes):
    """LeNet parameters in PyTorch layout (same uniform init scheme as nn.Conv2d/Linear)."""
    ks = jax.random.split(key, 10)

    def u(k, shape, fan_in):
        bound = 1.0 / jnp.sqrt(jnp.float32(fan_in))
        return jax.random.uniform(k, shape, jnp.float32, -bound, bound)

    return {
        "conv1_w": u(ks[0], (6, 3, 5, 5), 3 * 5 * 5),
        "conv1_b": u(ks[1], (6,), 3 * 5 * 5),
        "conv2_w": u(ks[2], (16, 6, 5, 5), 6 * 5 * 5),
        "conv2_b": u(ks[3], (16,), 6 * 5 * 5),
        "fc1_w": u(ks[4], (120, 16 * 5 * 5), 16 * 5 * 5),
        "fc1_b": u(ks[5], (120,), 16 * 5 * 5),
        "fc2_w": u(ks[6], (84, 120), 120),
        "fc2_b": u(ks[7], (84,), 120),
        "fc3_w": u(ks[8], (classes, 84), 84),
        "fc3_b": u(ks[9], (classes,), 84),
    }


def _fold_conv_pool_weight(w, b):
    """Fold 5x5 conv + 2x2/2 max-pool into one (36*C, 4*128) matmul weight.

    Lane group g holds the conv filter shifted to pool-window offset POOL_TAPS[g],
    so a max over the 4 groups of the ReLU'd matmul output == ReLU+max-pool of the conv.
    Output channels are zero-padded to 128 lanes.
    """
    o, c, kh, kw = w.shape                            # (O, C, 5, 5), PyTorch OIHW
    win = kh + 1                                      # 6x6 receptive field per pooled pixel
    w_t = jnp.transpose(w, (2, 3, 1, 0))              # (kh, kw, c, o)
    w_big = jnp.zeros((win * win * c, 4 * LANES), jnp.float32)
    b_big = jnp.zeros((1, 4 * LANES), jnp.float32)
    for g, (dh, dw) in enumerate(POOL_TAPS):
        for i in range(kh):
            for j in range(kw):
                row = ((i + dh) * win + (j + dw)) * c
                w_big = w_big.at[row:row + c, g * LANES:g * LANES + o].set(w_t[i, j])
        b_big = b_big.at[0, g * LANES:g * LANES + o].set(b)
    return w_big, b_big


def _pad_fc(w_t, b, k_pad):
    """(K, N) matmul weight + (N,) bias -> zero-padded (k_pad, 128) / (1, 128)."""
    k, n = w_t.shape
    assert n <= LANES and k <= k_pad
    w_p = jnp.zeros((k_pad, LANES), jnp.float32).at[:k, :n].set(w_t)
    b_p = jnp.zeros((1, LANES), jnp.float32).at[0, :n].set(b)
    return w_p, b_p


def prepare_params(params):
    """One-time weight preprocessing (hoisted out of the forward pass)."""
    w1, b1 = _fold_conv_pool_weight(params["conv1_w"], params["conv1_b"])
    w2, b2 = _fold_conv_pool_weight(params["conv2_w"], params["conv2_b"])
    # fc1 input features are re-ordered from PyTorch's NCHW flatten (c, h, w) to the
    # NHWC flatten (h, w, c) produced by the conv stages.
    f1 = params["fc1_w"].reshape(-1, 16, 5, 5).transpose(2, 3, 1, 0).reshape(400, -1)
    wf1, bf1 = _pad_fc(f1, params["fc1_b"], 400)
    wf2, bf2 = _pad_fc(params["fc2_w"].T, params["fc2_b"], LANES)
    wf3, bf3 = _pad_fc(params["fc3_w"].T, params["fc3_b"], LANES)
    return {"conv1": (w1, b1), "conv2": (w2, b2),
            "fc1": (wf1, bf1), "fc2": (wf2, bf2), "fc3": (wf3, bf3)}


# ---------------------------------------------------------------------------
# Forward pass
# ---------------------------------------------------------------------------

def lenet_forward(prep, x, *, classes):
    """x: (B, 3, 32, 32) float32 NCHW (matching the PyTorch module)."""
    b = x.shape[0]
    x = jnp.transpose(x, (0, 2, 3, 1))                          # single NHWC convert

    p1 = _pool_receptive_patches(x, 14)                         # (B*196, 108)
    h1 = conv_pool_stage(p1, *prep["conv1"])                    # (B*196, 128), 6 valid

    h1 = h1.reshape(b, 14, 14, LANES)[..., :6]                  # (B, 14, 14, 6)
    p2 = _pool_receptive_patches(h1, 5)                         # (B*25, 216)
    h2 = conv_pool_stage(p2, *prep["conv2"])                    # (B*25, 128), 16 valid

    f = h2.reshape(b, 5, 5, LANES)[..., :16].reshape(b, 400)    # NHWC flatten
    out = mlp_stage(f, *prep["fc1"], *prep["fc2"], *prep["fc3"])  # (B, 128)
    return out[:, :classes]                                     # slice padding at the end


# ---------------------------------------------------------------------------
# Pure-JAX reference (for a correctness assert only)
# ---------------------------------------------------------------------------

def _reference_forward(params, x):
    dn = ("NCHW", "OIHW", "NCHW")
    hp = lax.Precision.HIGHEST

    def conv_relu(y, w, b):
        y = lax.conv_general_dilated(y, w, (1, 1), "VALID",
                                     dimension_numbers=dn, precision=hp)
        return jax.nn.relu(y + b[None, :, None, None])

    def pool(y):
        return lax.reduce_window(y, -jnp.inf, lax.max,
                                 (1, 1, 2, 2), (1, 1, 2, 2), "VALID")

    y = pool(conv_relu(x, params["conv1_w"], params["conv1_b"]))
    y = pool(conv_relu(y, params["conv2_w"], params["conv2_b"]))
    y = y.reshape(y.shape[0], -1)
    y = jax.nn.relu(jnp.dot(y, params["fc1_w"].T, precision=hp) + params["fc1_b"])
    y = jax.nn.relu(jnp.dot(y, params["fc2_w"].T, precision=hp) + params["fc2_b"])
    y = jax.nn.relu(jnp.dot(y, params["fc3_w"].T, precision=hp) + params["fc3_b"])
    return y


if __name__ == "__main__":
    classes = 10
    key = jax.random.PRNGKey(0)
    k_param, k_x = jax.random.split(key)

    params = init_params(k_param, classes)
    prep = prepare_params(params)                      # one-time weight preprocessing
    x = jax.random.normal(k_x, (2, 3, 32, 32), dtype=jnp.float32)

    fwd = jax.jit(functools.partial(lenet_forward, classes=classes))
    out = jax.block_until_ready(fwd(prep, x))
    assert out.shape == (2, classes), out.shape

    ref = _reference_forward(params, x)
    assert jnp.allclose(out, ref, rtol=5e-2, atol=5e-2), float(jnp.max(jnp.abs(out - ref)))

    print("KERNEL_OK")
</pallas_src>

<mosaic_0001>
module attributes {stable_mosaic.version = 11 : i64} {
  func.func @_conv_pool_kernel(%arg0: memref<392x108xf32, #tpu.memory_space<vmem>>, %arg1: memref<108x512xf32, #tpu.memory_space<vmem>>, %arg2: memref<1x512xf32, #tpu.memory_space<vmem>>, %arg3: memref<392x128xf32, #tpu.memory_space<vmem>>) attributes {dimension_semantics = [], scalar_prefetch = 0 : i64, scratch_operands = 0 : i64, tpu.core_type = #tpu.core_type<tc>} {
    %c0 = arith.constant 0 : index
    %c0_0 = arith.constant 0 : index
    %0 = vector.load %arg0[%c0, %c0_0] : memref<392x108xf32, #tpu.memory_space<vmem>>, vector<392x108xf32>
    %c0_1 = arith.constant 0 : index
    %c0_2 = arith.constant 0 : index
    %1 = vector.load %arg1[%c0_1, %c0_2] : memref<108x512xf32, #tpu.memory_space<vmem>>, vector<108x512xf32>
    %cst = arith.constant dense<0.000000e+00> : vector<392x512xf32>
    %2 = tpu.matmul %0, %1, %cst {dimension_numbers = #tpu.dot_dimension_numbers<[1], [0], [0], [1], [0, 0, 1, 1], [], []>} : vector<392x108xf32>, vector<108x512xf32>, vector<392x512xf32> -> vector<392x512xf32>
    %c0_3 = arith.constant 0 : index
    %c0_4 = arith.constant 0 : index
    %3 = vector.load %arg2[%c0_3, %c0_4] : memref<1x512xf32, #tpu.memory_space<vmem>>, vector<1x512xf32>
    %4 = vector.broadcast %3 : vector<1x512xf32> to vector<392x512xf32>
    %5 = arith.addf %2, %4 : vector<392x512xf32>
    %cst_5 = arith.constant 0.000000e+00 : f32
    %6 = vector.broadcast %cst_5 : f32 to vector<392x512xf32>
    %7 = arith.maximumf %5, %6 : vector<392x512xf32>
    %8 = vector.extract_strided_slice %7 {offsets = [0, 0], sizes = [392, 128], strides = [1, 1]} : vector<392x512xf32> to vector<392x128xf32>
    %9 = vector.extract_strided_slice %7 {offsets = [0, 128], sizes = [392, 128], strides = [1, 1]} : vector<392x512xf32> to vector<392x128xf32>
    %10 = arith.maximumf %8, %9 : vector<392x128xf32>
    %11 = vector.extract_strided_slice %7 {offsets = [0, 256], sizes = [392, 128], strides = [1, 1]} : vector<392x512xf32> to vector<392x128xf32>
    %12 = vector.extract_strided_slice %7 {offsets = [0, 384], sizes = [392, 128], strides = [1, 1]} : vector<392x512xf32> to vector<392x128xf32>
    %13 = arith.maximumf %11, %12 : vector<392x128xf32>
    %14 = arith.maximumf %10, %13 : vector<392x128xf32>
    %c0_6 = arith.constant 0 : index
    %c0_7 = arith.constant 0 : index
    %15 = vector.load %arg3[%c0_6, %c0_7] : memref<392x128xf32, #tpu.memory_space<vmem>>, vector<392x128xf32>
    tpu.vector_store %arg3[%c0_6, %c0_7], %14 {strides = array<i32>} : memref<392x128xf32, #tpu.memory_space<vmem>>, vector<392x128xf32>,
    return
  }
}

module attributes {stable_mosaic.version = 11 : i64} {
  func.func @_conv_pool_kernel(%arg0: memref<50x216xf32, #tpu.memory_space<vmem>>, %arg1: memref<216x512xf32, #tpu.memory_space<vmem>>, %arg2: memref<1x512xf32, #tpu.memory_space<vmem>>, %arg3: memref<50x128xf32, #tpu.memory_space<vmem>>) attributes {dimension_semantics = [], scalar_prefetch = 0 : i64, scratch_operands = 0 : i64, tpu.core_type = #tpu.core_type<tc>} {
    %c0 = arith.constant 0 : index
    %c0_0 = arith.constant 0 : index
    %0 = vector.load %arg0[%c0, %c0_0] : memref<50x216xf32, #tpu.memory_space<vmem>>, vector<50x216xf32>
    %c0_1 = arith.constant 0 : index
    %c0_2 = arith.constant 0 : index
    %1 = vector.load %arg1[%c0_1, %c0_2] : memref<216x512xf32, #tpu.memory_space<vmem>>, vector<216x512xf32>
    %cst = arith.constant dense<0.000000e+00> : vector<50x512xf32>
    %2 = tpu.matmul %0, %1, %cst {dimension_numbers = #tpu.dot_dimension_numbers<[1], [0], [0], [1], [0, 0, 1, 1], [], []>} : vector<50x216xf32>, vector<216x512xf32>, vector<50x512xf32> -> vector<50x512xf32>
    %c0_3 = arith.constant 0 : index
    %c0_4 = arith.constant 0 : index
    %3 = vector.load %arg2[%c0_3, %c0_4] : memref<1x512xf32, #tpu.memory_space<vmem>>, vector<1x512xf32>
    %4 = vector.broadcast %3 : vector<1x512xf32> to vector<50x512xf32>
    %5 = arith.addf %2, %4 : vector<50x512xf32>
    %cst_5 = arith.constant 0.000000e+00 : f32
    %6 = vector.broadcast %cst_5 : f32 to vector<50x512xf32>
    %7 = arith.maximumf %5, %6 : vector<50x512xf32>
    %8 = vector.extract_strided_slice %7 {offsets = [0, 0], sizes = [50, 128], strides = [1, 1]} : vector<50x512xf32> to vector<50x128xf32>
    %9 = vector.extract_strided_slice %7 {offsets = [0, 128], sizes = [50, 128], strides = [1, 1]} : vector<50x512xf32> to vector<50x128xf32>
    %10 = arith.maximumf %8, %9 : vector<50x128xf32>
    %11 = vector.extract_strided_slice %7 {offsets = [0, 256], sizes = [50, 128], strides = [1, 1]} : vector<50x512xf32> to vector<50x128xf32>
    %12 = vector.extract_strided_slice %7 {offsets = [0, 384], sizes = [50, 128], strides = [1, 1]} : vector<50x512xf32> to vector<50x128xf32>
    %13 = arith.maximumf %11, %12 : vector<50x128xf32>
    %14 = arith.maximumf %10, %13 : vector<50x128xf32>
    %c0_6 = arith.constant 0 : index
    %c0_7 = arith.constant 0 : index
    %15 = vector.load %arg3[%c0_6, %c0_7] : memref<50x128xf32, #tpu.memory_space<vmem>>, vector<50x128xf32>
    tpu.vector_store %arg3[%c0_6, %c0_7], %14 {strides = array<i32>} : memref<50x128xf32, #tpu.memory_space<vmem>>, vector<50x128xf32>,
    return
  }
}

module attributes {stable_mosaic.version = 11 : i64} {
  func.func @_mlp_kernel(%arg0: memref<2x400xf32, #tpu.memory_space<vmem>>, %arg1: memref<400x128xf32, #tpu.memory_space<vmem>>, %arg2: memref<1x128xf32, #tpu.memory_space<vmem>>, %arg3: memref<128x128xf32, #tpu.memory_space<vmem>>, %arg4: memref<1x128xf32, #tpu.memory_space<vmem>>, %arg5: memref<128x128xf32, #tpu.memory_space<vmem>>, %arg6: memref<1x128xf32, #tpu.memory_space<vmem>>, %arg7: memref<2x128xf32, #tpu.memory_space<vmem>>) attributes {dimension_semantics = [], scalar_prefetch = 0 : i64, scratch_operands = 0 : i64, tpu.core_type = #tpu.core_type<tc>} {
    %c0 = arith.constant 0 : index
    %c0_0 = arith.constant 0 : index
    %0 = vector.load %arg0[%c0, %c0_0] : memref<2x400xf32, #tpu.memory_space<vmem>>, vector<2x400xf32>
    %c0_1 = arith.constant 0 : index
    %c0_2 = arith.constant 0 : index
    %1 = vector.load %arg1[%c0_1, %c0_2] : memref<400x128xf32, #tpu.memory_space<vmem>>, vector<400x128xf32>
    %cst = arith.constant dense<0.000000e+00> : vector<2x128xf32>
    %2 = tpu.matmul %0, %1, %cst {dimension_numbers = #tpu.dot_dimension_numbers<[1], [0], [0], [1], [0, 0, 1, 1], [], []>} : vector<2x400xf32>, vector<400x128xf32>, vector<2x128xf32> -> vector<2x128xf32>
    %c0_3 = arith.constant 0 : index
    %c0_4 = arith.constant 0 : index
    %3 = vector.load %arg2[%c0_3, %c0_4] : memref<1x128xf32, #tpu.memory_space<vmem>>, vector<1x128xf32>
    %4 = vector.broadcast %3 : vector<1x128xf32> to vector<2x128xf32>
    %5 = arith.addf %2, %4 : vector<2x128xf32>
    %cst_5 = arith.constant 0.000000e+00 : f32
    %6 = vector.broadcast %cst_5 : f32 to vector<2x128xf32>
    %7 = arith.maximumf %5, %6 : vector<2x128xf32>
    %c0_6 = arith.constant 0 : index
    %c0_7 = arith.constant 0 : index
    %8 = vector.load %arg3[%c0_6, %c0_7] : memref<128x128xf32, #tpu.memory_space<vmem>>, vector<128x128xf32>
    %cst_8 = arith.constant dense<0.000000e+00> : vector<2x128xf32>
    %9 = tpu.matmul %7, %8, %cst_8 {dimension_numbers = #tpu.dot_dimension_numbers<[1], [0], [0], [1], [0, 0, 1, 1], [], []>} : vector<2x128xf32>, vector<128x128xf32>, vector<2x128xf32> -> vector<2x128xf32>
    %c0_9 = arith.constant 0 : index
    %c0_10 = arith.constant 0 : index
    %10 = vector.load %arg4[%c0_9, %c0_10] : memref<1x128xf32, #tpu.memory_space<vmem>>, vector<1x128xf32>
    %11 = vector.broadcast %10 : vector<1x128xf32> to vector<2x128xf32>
    %12 = arith.addf %9, %11 : vector<2x128xf32>
    %cst_11 = arith.constant 0.000000e+00 : f32
    %13 = vector.broadcast %cst_11 : f32 to vector<2x128xf32>
    %14 = arith.maximumf %12, %13 : vector<2x128xf32>
    %c0_12 = arith.constant 0 : index
    %c0_13 = arith.constant 0 : index
    %15 = vector.load %arg5[%c0_12, %c0_13] : memref<128x128xf32, #tpu.memory_space<vmem>>, vector<128x128xf32>
    %cst_14 = arith.constant dense<0.000000e+00> : vector<2x128xf32>
    %16 = tpu.matmul %14, %15, %cst_14 {dimension_numbers = #tpu.dot_dimension_numbers<[1], [0], [0], [1], [0, 0, 1, 1], [], []>} : vector<2x128xf32>, vector<128x128xf32>, vector<2x128xf32> -> vector<2x128xf32>
    %c0_15 = arith.constant 0 : index
    %c0_16 = arith.constant 0 : index
    %17 = vector.load %arg6[%c0_15, %c0_16] : memref<1x128xf32, #tpu.memory_space<vmem>>, vector<1x128xf32>
    %18 = vector.broadcast %17 : vector<1x128xf32> to vector<2x128xf32>
    %19 = arith.addf %16, %18 : vector<2x128xf32>
    %cst_17 = arith.constant 0.000000e+00 : f32
    %20 = vector.broadcast %cst_17 : f32 to vector<2x128xf32>
    %21 = arith.maximumf %19, %20 : vector<2x128xf32>
    %c0_18 = arith.constant 0 : index
    %c0_19 = arith.constant 0 : index
    %22 = vector.load %arg7[%c0_18, %c0_19] : memref<2x128xf32, #tpu.memory_space<vmem>>, vector<2x128xf32>
    tpu.vector_store %arg7[%c0_18, %c0_19], %21 {strides = array<i32>} : memref<2x128xf32, #tpu.memory_space<vmem>>, vector<2x128xf32>,
    return
  }
}

</mosaic_0001>

<bundles_post_ra>
// kernel: lenet_forward.3
= control target key start
LH: loop header
LB: loop body
LE: loop exit
PB: predicated region body
PF: predicated region fallthrough
CT: control target
= control target key end

     0   :  { %vm277_vm0 = vcmask 1043456   ;;  %vm129_vm1 = vcmask 883712   ;;  %s2431_s1 = inlined_call_operand.vmem [shape: f32[108,512], index: 1, kind: input, shape index: {}]   ;;  %s2432_s0 = inlined_call_operand.vmem [shape: f32[392,108], index: 0, kind: input, shape index: {}]   ;;  %s2433_s2 = inlined_call_operand.vmem [shape: f32[1,512], index: 2, kind: input, shape index: {}]   ;;  %s2434_s3 = inlined_call_operand.vmem [shape: f32[392,128], index: 3, kind: output, shape index: {}]  }
   0x1   :  { %v117_v0 = vld [vmem:[%s2431_s1 + $0x1b0] sm:$0xf]  ;;  %v118_v1 = vld [vmem:[%s2431_s1 + $0x1b8] sm:$0xf]  ;;  %v115_v6 = vld [vmem:[%s2431_s1 + $0x1a0] sm:$0xf] }
   0x2   :  { %v113_v2 = vld [vmem:[%s2431_s1 + $0x190] sm:$0xff]  ;;  %1442 = vmatpush.msk.msra.mxu2 %vm277_vm0, %v117_v0  ;;  %1492 = vmatpush.msk.msra.mxu3 %vm277_vm0, %v118_v1  ;;  %v114_v3 = vld [vmem:[%s2431_s1 + $0x198] sm:$0xff]  ;;  %v116_v7 = vld [vmem:[%s2431_s1 + $0x1a8] sm:$0xf] }
   0x3   :  { %v109_v4 = vld [vmem:[%s2431_s1 + $0x170] sm:$0xff]  ;;  %v110_v5 = vld [vmem:[%s2431_s1 + $0x178] sm:$0xff]  ;;  %v111_v8 = vld [vmem:[%s2431_s1 + $0x180] sm:$0xff]  ;;  %1342 = vmatpush.msk.msra.mxu0 %vm277_vm0, %v115_v6  ;;  %1392 = vmatpush.msk.msra.mxu1 %vm277_vm0, %v116_v7 }
   0x4   :  { %621 = vmatpush.msra.mxu2 %v113_v2  ;;  %785 = vmatpush.msra.mxu3 %v114_v3  ;;  %v112_v9 = vld [vmem:[%s2431_s1 + $0x188] sm:$0xff]  ;;  %v105_v10 = vld [vmem:[%s2431_s1 + $0x150] sm:$0xff]  ;;  %v106_v11 = vld [vmem:[%s2431_s1 + $0x158] sm:$0xff] }
   0x5   :  { %v107_v12 = vld [vmem:[%s2431_s1 + $0x160] sm:$0xff]  ;;  %v108_v13 = vld [vmem:[%s2431_s1 + $0x168] sm:$0xff]  ;;  %293 = vmatpush.msra.mxu0 %v111_v8  ;;  %457 = vmatpush.msra.mxu1 %v112_v9  ;;  %v101_v14 = vld [vmem:[%s2431_s1 + $0x130] sm:$0xff] }
   0x6   :  { %622 = vmatpush.msra.mxu2 %v109_v4  ;;  %786 = vmatpush.msra.mxu3 %v110_v5  ;;  %v102_v15 = vld [vmem:[%s2431_s1 + $0x138] sm:$0xff]  ;;  %v103_v16 = vld [vmem:[%s2431_s1 + $0x140] sm:$0xff]  ;;  %v104_v17 = vld [vmem:[%s2431_s1 + $0x148] sm:$0xff] }
   0x7   :  { %294 = vmatpush.msra.mxu0 %v107_v12  ;;  %458 = vmatpush.msra.mxu1 %v108_v13  ;;  %v97_v18 = vld [vmem:[%s2431_s1 + $0x110] sm:$0xff]  ;;  %v98_v19 = vld [vmem:[%s2431_s1 + $0x118] sm:$0xff]  ;;  %v99_v20 = vld [vmem:[%s2431_s1 + $0x120] sm:$0xff] }
   0x8   :  { %623 = vmatpush.msra.mxu2 %v105_v10  ;;  %787 = vmatpush.msra.mxu3 %v106_v11  ;;  %v100_v21 = vld [vmem:[%s2431_s1 + $0x128] sm:$0xff]  ;;  %v93_v22 = vld [vmem:[%s2431_s1 + $0xf0] sm:$0xff]  ;;  %v94_v23 = vld [vmem:[%s2431_s1 + $0xf8] sm:$0xff] }
   0x9   :  { %295 = vmatpush.msra.mxu0 %v103_v16  ;;  %459 = vmatpush.msra.mxu1 %v104_v17  ;;  %v95_v24 = vld [vmem:[%s2431_s1 + $0x100] sm:$0xff]  ;;  %v96_v25 = vld [vmem:[%s2431_s1 + $0x108] sm:$0xff]  ;;  %v89_v26 = vld [vmem:[%s2431_s1 + $0xd0] sm:$0xff] }
   0xa   :  { %624 = vmatpush.msra.mxu2 %v101_v14  ;;  %788 = vmatpush.msra.mxu3 %v102_v15  ;;  %v90_v27 = vld [vmem:[%s2431_s1 + $0xd8] sm:$0xff]  ;;  %v91_v28 = vld [vmem:[%s2431_s1 + $0xe0] sm:$0xff]  ;;  %v92_v29 = vld [vmem:[%s2431_s1 + $0xe8] sm:$0xff] }
   0xb   :  { %296 = vmatpush.msra.mxu0 %v99_v20  ;;  %460 = vmatpush.msra.mxu1 %v100_v21  ;;  %v85_v30 = vld [vmem:[%s2431_s1 + $0xb0] sm:$0xff]  ;;  %v86_v31 = vld [vmem:[%s2431_s1 + $0xb8] sm:$0xff]  ;;  %v87_v32 = vld [vmem:[%s2431_s1 + $0xc0] sm:$0xff] }
   0xc   :  { %625 = vmatpush.msra.mxu2 %v97_v18  ;;  %789 = vmatpush.msra.mxu3 %v98_v19  ;;  %v88_v33 = vld [vmem:[%s2431_s1 + $0xc8] sm:$0xff]  ;;  %v81_v34 = vld [vmem:[%s2431_s1 + $0x90] sm:$0xff]  ;;  %v82_v35 = vld [vmem:[%s2431_s1 + $0x98] sm:$0xff] }
   0xd   :  { %297 = vmatpush.msra.mxu0 %v95_v24  ;;  %461 = vmatpush.msra.mxu1 %v96_v25  ;;  %v83_v36 = vld [vmem:[%s2431_s1 + $0xa0] sm:$0xff]  ;;  %v84_v37 = vld [vmem:[%s2431_s1 + $0xa8] sm:$0xff]  ;;  %v77_v38 = vld [vmem:[%s2431_s1 + $0x70] sm:$0xff] }
   0xe   :  { %626 = vmatpush.msra.mxu2 %v93_v22  ;;  %790 = vmatpush.msra.mxu3 %v94_v23  ;;  %v78_v39 = vld [vmem:[%s2431_s1 + $0x78] sm:$0xff]  ;;  %v79_v40 = vld [vmem:[%s2431_s1 + $0x80] sm:$0xff]  ;;  %v80_v41 = vld [vmem:[%s2431_s1 + $0x88] sm:$0xff] }
   0xf   :  { %298 = vmatpush.msra.mxu0 %v91_v28  ;;  %462 = vmatpush.msra.mxu1 %v92_v29  ;;  %v73_v42 = vld [vmem:[%s2431_s1 + $0x50] sm:$0xff]  ;;  %v74_v43 = vld [vmem:[%s2431_s1 + $0x58] sm:$0xff]  ;;  %v75_v44 = vld [vmem:[%s2431_s1 + $0x60] sm:$0xff] }
  0x10   :  { %627 = vmatpush.msra.mxu2 %v89_v26  ;;  %791 = vmatpush.msra.mxu3 %v90_v27  ;;  %v76_v45 = vld [vmem:[%s2431_s1 + $0x68] sm:$0xff]  ;;  %v69_v46 = vld [vmem:[%s2431_s1 + $0x30] sm:$0xff]  ;;  %v70_v47 = vld [vmem:[%s2431_s1 + $0x38] sm:$0xff] }
  0x11   :  { %299 = vmatpush.msra.mxu0 %v87_v32  ;;  %463 = vmatpush.msra.mxu1 %v88_v33  ;;  %v71_v48 = vld [vmem:[%s2431_s1 + $0x40] sm:$0xff]  ;;  %v72_v49 = vld [vmem:[%s2431_s1 + $0x48] sm:$0xff]  ;;  %v65_v50 = vld [vmem:[%s2431_s1 + $0x10] sm:$0xff] }
  0x12   :  { %628 = vmatpush.msra.mxu2 %v85_v30  ;;  %792 = vmatpush.msra.mxu3 %v86_v31  ;;  %v66_v51 = vld [vmem:[%s2431_s1 + $0x18] sm:$0xff]  ;;  %v14_v52 = vld [vmem:[%s2432_s0] sm:$0xff]  ;;  %v68_v54 = vld [vmem:[%s2431_s1 + $0x28] sm:$0xff] }
  0x13   :  { %300 = vmatpush.msra.mxu0 %v83_v36  ;;  %464 = vmatpush.msra.mxu1 %v84_v37  ;;  %v67_v53 = vld [vmem:[%s2431_s1 + $0x20] sm:$0xff]  ;;  %v64_v56 = vld [vmem:[%s2431_s1 + $0x8] sm:$0xff]  ;;  %v16_v58 = vld [vmem:[%s2432_s0 + $0x10] sm:$0xff] }
  0x14   :  { %629 = vmatpush.msra.mxu2 %v81_v34  ;;  %793 = vmatpush.msra.mxu3 %v82_v35  ;;  %v63_v55 = vld [vmem:[%s2431_s1] sm:$0xff]  ;;  %v15_v57 = vld [vmem:[%s2432_s0 + $0x8] sm:$0xff]  ;;  %v17_v59 = vld [vmem:[%s2432_s0 + $0x18] sm:$0xff] }
  0x15   :  { %301 = vmatpush.msra.mxu0 %v79_v40  ;;  %465 = vmatpush.msra.mxu1 %v80_v41  ;;  %v18_v60 = vld [vmem:[%s2432_s0 + $0x20] sm:$0xff]  ;;  %v19_v61 = vld [vmem:[%s2432_s0 + $0x28] sm:$0xff]  ;;  %v20_v62 = vld [vmem:[%s2432_s0 + $0x30] sm:$0xff] }
  0x16   :  { %630 = vmatpush.msra.mxu2 %v77_v38  ;;  %794 = vmatpush.msra.mxu3 %v78_v39  ;;  %v21_v63 = vld [vmem:[%s2432_s0 + $0x38] sm:$0xff]  ;;  %v22_v0 = vld [vmem:[%s2432_s0 + $0x40] sm:$0xff]  ;;  %v23_v1 = vld [vmem:[%s2432_s0 + $0x48] sm:$0xff] }
  0x17   :  { %302 = vmatpush.msra.mxu0 %v75_v44  ;;  %466 = vmatpush.msra.mxu1 %v76_v45  ;;  %v24_v2 = vld [vmem:[%s2432_s0 + $0x50] sm:$0xff]  ;;  %v25_v3 = vld [vmem:[%s2432_s0 + $0x58] sm:$0xff]  ;;  %v26_v4 = vld [vmem:[%s2432_s0 + $0x60] sm:$0xff] }
  0x18   :  { %631 = vmatpush.msra.mxu2 %v73_v42  ;;  %795 = vmatpush.msra.mxu3 %v74_v43  ;;  %v27_v5 = vld [vmem:[%s2432_s0 + $0x68] sm:$0xff]  ;;  %v28_v6 = vld [vmem:[%s2432_s0 + $0x70] sm:$0xff]  ;;  %v29_v7 = vld [vmem:[%s2432_s0 + $0x78] sm:$0xff] }
  0x19   :  { %303 = vmatpush.msra.mxu0 %v71_v48  ;;  %467 = vmatpush.msra.mxu1 %v72_v49  ;;  %v119_v8 = vld [vmem:[%s2433_s2] sm:$0xf]  ;;  %v31_v24 = vld [vmem:[%s2432_s0 + $0x88] sm:$0xff]  ;;  %v32_v40 = vld [vmem:[%s2432_s0 + $0x90] sm:$0xff] }
  0x1a   :  { %632 = vmatpush.msra.mxu2 %v69_v46  ;;  %796 = vmatpush.msra.mxu3 %v70_v47  ;;  %v30_v9 = vld [vmem:[%s2432_s0 + $0x80] sm:$0xff]  ;;  %v1852_v10 = vperm.slane %v119_v8, 0  ;;  %v1854_v11 = vperm.slane %v119_v8, 1  ;;  %v1858_v12 = vperm.slane %v119_v8, 2  ;;  %v1860_v13 = vperm.slane %v119_v8, 3 }
  0x1b   :  { %304 = vmatpush.msra.mxu0 %v67_v53  ;;  %468 = vmatpush.msra.mxu1 %v68_v54  ;;  %v34_v8 = vld [vmem:[%s2432_s0 + $0xa0] sm:$0xff] }
  0x1c   :  { %633 = vmatpush.msra.mxu2 %v65_v50  ;;  %797 = vmatpush.msra.mxu3 %v66_v51 }
  0x1d   :  { %1443 = vmatmul.msk.f32.vlgmr.msra.gmra.mxu2 %vm129_vm1, %v14_v52  ;;  %1493 = vmatmul.msk.f32.vlgmr.msra.gmra.mxu3 %vm129_vm1, %v14_v52 }
  0x1e   :  { %305 = vmatpush.msra.mxu0 %v63_v55  ;;  %469 = vmatpush.msra.mxu1 %v64_v56  ;;  %v33_v56 = vld [vmem:[%s2432_s0 + $0x98] sm:$0xff] }
  0x1f   :  { %1343 = vmatmul.msk.f32.vlgmr.msra.gmra.mxu0 %vm129_vm1, %v14_v52  ;;  %1393 = vmatmul.msk.f32.vlgmr.msra.gmra.mxu1 %vm129_vm1, %v14_v52 }
  0x25   :  { %1444 = vmatmul.msk.f32.gmra.mxu2 %vm129_vm1, %v15_v57  ;;  %1494 = vmatmul.msk.f32.gmra.mxu3 %vm129_vm1, %v15_v57 }
  0x27   :  { %1344 = vmatmul.msk.f32.gmra.mxu0 %vm129_vm1, %v15_v57  ;;  %1394 = vmatmul.msk.f32.gmra.mxu1 %vm129_vm1, %v15_v57 }
  0x2d   :  { %1445 = vmatmul.msk.f32.gmra.mxu2 %vm129_vm1, %v16_v58  ;;  %1495 = vmatmul.msk.f32.gmra.mxu3 %vm129_vm1, %v16_v58 }
  0x2f   :  { %1345 = vmatmul.msk.f32.gmra.mxu0 %vm129_vm1, %v16_v58  ;;  %1395 = vmatmul.msk.f32.gmra.mxu1 %vm129_vm1, %v16_v58 }
  0x35   :  { %1446 = vmatmul.msk.f32.gmra.mxu2 %vm129_vm1, %v17_v59  ;;  %1496 = vmatmul.msk.f32.gmra.mxu3 %vm129_vm1, %v17_v59 }
  0x37   :  { %1346 = vmatmul.msk.f32.gmra.mxu0 %vm129_vm1, %v17_v59  ;;  %1396 = vmatmul.msk.f32.gmra.mxu1 %vm129_vm1, %v17_v59 }
  0x3d   :  { %1447 = vmatmul.msk.f32.gmra.mxu2 %vm129_vm1, %v18_v60  ;;  %1497 = vmatmul.msk.f32.gmra.mxu3 %vm129_vm1, %v18_v60 }
  0x3f   :  { %1347 = vmatmul.msk.f32.gmra.mxu0 %vm129_vm1, %v18_v60  ;;  %1397 = vmatmul.msk.f32.gmra.mxu1 %vm129_vm1, %v18_v60 }
  0x45   :  { %1448 = vmatmul.msk.f32.gmra.mxu2 %vm129_vm1, %v19_v61  ;;  %1498 = vmatmul.msk.f32.gmra.mxu3 %vm129_vm1, %v19_v61 }
  0x47   :  { %1348 = vmatmul.msk.f32.gmra.mxu0 %vm129_vm1, %v19_v61  ;;  %1398 = vmatmul.msk.f32.gmra.mxu1 %vm129_vm1, %v19_v61 }
  0x4d   :  { %1449 = vmatmul.msk.f32.gmra.mxu2 %vm129_vm1, %v20_v62  ;;  %1499 = vmatmul.msk.f32.gmra.mxu3 %vm129_vm1, %v20_v62 }
  0x4f   :  { %1349 = vmatmul.msk.f32.gmra.mxu0 %vm129_vm1, %v20_v62  ;;  %1399 = vmatmul.msk.f32.gmra.mxu1 %vm129_vm1, %v20_v62 }
  0x55   :  { %1450 = vmatmul.msk.f32.gmra.mxu2 %vm129_vm1, %v21_v63  ;;  %1500 = vmatmul.msk.f32.gmra.mxu3 %vm129_vm1, %v21_v63 }
  0x57   :  { %1350 = vmatmul.msk.f32.gmra.mxu0 %vm129_vm1, %v21_v63  ;;  %1400 = vmatmul.msk.f32.gmra.mxu1 %vm129_vm1, %v21_v63 }
  0x5d   :  { %1451 = vmatmul.msk.f32.gmra.mxu2 %vm129_vm1, %v22_v0  ;;  %1501 = vmatmul.msk.f32.gmra.mxu3 %vm129_vm1, %v22_v0 }
  0x5f   :  { %1351 = vmatmul.msk.f32.gmra.mxu0 %vm129_vm1, %v22_v0  ;;  %1401 = vmatmul.msk.f32.gmra.mxu1 %vm129_vm1, %v22_v0 }
  0x65   :  { %1452 = vmatmul.msk.f32.gmra.mxu2 %vm129_vm1, %v23_v1  ;;  %1502 = vmatmul.msk.f32.gmra.mxu3 %vm129_vm1, %v23_v1 }
  0x67   :  { %1352 = vmatmul.msk.f32.gmra.mxu0 %vm129_vm1, %v23_v1  ;;  %1402 = vmatmul.msk.f32.gmra.mxu1 %vm129_vm1, %v23_v1 }
  0x6d   :  { %1453 = vmatmul.msk.f32.gmra.mxu2 %vm129_vm1, %v24_v2  ;;  %1503 = vmatmul.msk.f32.gmra.mxu3 %vm129_vm1, %v24_v2 }
  0x6f   :  { %1353 = vmatmul.msk.f32.gmra.mxu0 %vm129_vm1, %v24_v2  ;;  %1403 = vmatmul.msk.f32.gmra.mxu1 %vm129_vm1, %v24_v2 }
  0x75   :  { %1454 = vmatmul.msk.f32.gmra.mxu2 %vm129_vm1, %v25_v3  ;;  %1504 = vmatmul.msk.f32.gmra.mxu3 %vm129_vm1, %v25_v3 }
  0x77   :  { %1354 = vmatmul.msk.f32.gmra.mxu0 %vm129_vm1, %v25_v3  ;;  %1404 = vmatmul.msk.f32.gmra.mxu1 %vm129_vm1, %v25_v3 }
  0x7d   :  { %1455 = vmatmul.msk.f32.gmra.mxu2 %vm129_vm1, %v26_v4  ;;  %1505 = vmatmul.msk.f32.gmra.mxu3 %vm129_vm1, %v26_v4 }
  0x7f   :  { %1355 = vmatmul.msk.f32.gmra.mxu0 %vm129_vm1, %v26_v4  ;;  %1405 = vmatmul.msk.f32.gmra.mxu1 %vm129_vm1, %v26_v4 }
  0x85   :  { %1456 = vmatmul.msk.f32.gmra.mxu2 %vm129_vm1, %v27_v5  ;;  %1506 = vmatmul.msk.f32.gmra.mxu3 %vm129_vm1, %v27_v5 }
  0x87   :  { %1356 = vmatmul.msk.f32.gmra.mxu0 %vm129_vm1, %v27_v5  ;;  %1406 = vmatmul.msk.f32.gmra.mxu1 %vm129_vm1, %v27_v5 }
  0x8d   :  { %1457 = vmatmul.msk.f32.gmra.mxu2 %vm129_vm1, %v28_v6  ;;  %1507 = vmatmul.msk.f32.gmra.mxu3 %vm129_vm1, %v28_v6 }
  0x8f   :  { %1357 = vmatmul.msk.f32.gmra.mxu0 %vm129_vm1, %v28_v6  ;;  %1407 = vmatmul.msk.f32.gmra.mxu1 %vm129_vm1, %v28_v6 }
  0x95   :  { %1458 = vmatmul.msk.f32.gmra.mxu2 %vm129_vm1, %v29_v7  ;;  %1508 = vmatmul.msk.f32.gmra.mxu3 %vm129_vm1, %v29_v7 }
  0x97   :  { %1358 = vmatmul.msk.f32.gmra.mxu0 %vm129_vm1, %v29_v7  ;;  %1408 = vmatmul.msk.f32.gmra.mxu1 %vm129_vm1, %v29_v7 }
  0x9c   :  { %v307_v14 = vpop.f32.mrf.mxu0  ;;  %v471_v15 = vpop.f32.mrf.mxu1 }
  0x9d   :  { %1459 = vmatmul.msk.f32.gmra.mxu2 %vm129_vm1, %v30_v9  ;;  %1509 = vmatmul.msk.f32.gmra.mxu3 %vm129_vm1, %v30_v9  ;;  %v308_v16 = vadd.f32 %v307_v14, %v1852_v10  ;;  %v472_v17 = vadd.f32 %v471_v15, %v1854_v11 }
  0x9f   :  { %v946_v20 = vmax.f32 %v308_v16, 0.0  ;;  %v947_v21 = vmax.f32 %v472_v17, 0.0  ;;  %1359 = vmatmul.msk.f32.gmra.mxu0 %vm129_vm1, %v30_v9  ;;  %1409 = vmatmul.msk.f32.gmra.mxu1 %vm129_vm1, %v30_v9 }
  0xa0   :  { %v635_v18 = vpop.f32.mrf.mxu2  ;;  %v799_v19 = vpop.f32.mrf.mxu3 }
  0xa1   :  { %v636_v22 = vadd.f32 %v635_v18, %v1858_v12  ;;  %v800_v23 = vadd.f32 %v799_v19, %v1860_v13  ;;  %v1142_v25 = vmax.f32 %v946_v20, %v947_v21 }
  0xa3   :  { %v948_v26 = vmax.f32 %v636_v22, 0.0  ;;  %v949_v27 = vmax.f32 %v800_v23, 0.0 }
  0xa4   :  { %v310_v29 = vpop.f32.mrf.mxu0  ;;  %v474_v30 = vpop.f32.mrf.mxu1 }
  0xa5   :  { %v1191_v28 = vmax.f32 %v948_v26, %v949_v27  ;;  %1460 = vmatmul.msk.f32.gmra.mxu2 %vm129_vm1, %v31_v24  ;;  %1510 = vmatmul.msk.f32.gmra.mxu3 %vm129_vm1, %v31_v24  ;;  %v311_v32 = vadd.f32 %v310_v29, %v1852_v10  ;;  %v475_v33 = vadd.f32 %v474_v30, %v1854_v11 }
  0xa7   :  { %v1240_v31 = vmax.f32 %v1142_v25, %v1191_v28  ;;  %v950_v36 = vmax.f32 %v311_v32, 0.0  ;;  %v951_v37 = vmax.f32 %v475_v33, 0.0  ;;  %1360 = vmatmul.msk.f32.gmra.mxu0 %vm129_vm1, %v31_v24  ;;  %1410 = vmatmul.msk.f32.gmra.mxu1 %vm129_vm1, %v31_v24  ;;  %v35_v28 = vld [vmem:[%s2432_s0 + $0xa8] sm:$0xff] }
  0xa8   :  { %v638_v34 = vpop.f32.mrf.mxu2  ;;  %v802_v35 = vpop.f32.mrf.mxu3 }
  0xa9   :  { %1289 = vst [vmem:[%s2434_s3] sm:$0xff] %v1240_v31  ;;  %v639_v38 = vadd.f32 %v638_v34, %v1858_v12  ;;  %v803_v39 = vadd.f32 %v802_v35, %v1860_v13  ;;  %v1143_v41 = vmax.f32 %v950_v36, %v951_v37 }
  0xab   :  { %v952_v42 = vmax.f32 %v639_v38, 0.0  ;;  %v953_v43 = vmax.f32 %v803_v39, 0.0 }
  0xac   :  { %v313_v45 = vpop.f32.mrf.mxu0  ;;  %v477_v46 = vpop.f32.mrf.mxu1 }
  0xad   :  { %v1192_v44 = vmax.f32 %v952_v42, %v953_v43  ;;  %1461 = vmatmul.msk.f32.gmra.mxu2 %vm129_vm1, %v32_v40  ;;  %1511 = vmatmul.msk.f32.gmra.mxu3 %vm129_vm1, %v32_v40  ;;  %v314_v48 = vadd.f32 %v313_v45, %v1852_v10  ;;  %v478_v49 = vadd.f32 %v477_v46, %v1854_v11 }
  0xaf   :  { %v1241_v47 = vmax.f32 %v1143_v41, %v1192_v44  ;;  %v954_v52 = vmax.f32 %v314_v48, 0.0  ;;  %v955_v53 = vmax.f32 %v478_v49, 0.0  ;;  %1361 = vmatmul.msk.f32.gmra.mxu0 %vm129_vm1, %v32_v40  ;;  %1411 = vmatmul.msk.f32.gmra.mxu1 %vm129_vm1, %v32_v40  ;;  %v36_v44 = vld [vmem:[%s2432_s0 + $0xb0] sm:$0xff] }
  0xb0   :  { %v641_v50 = vpop.f32.mrf.mxu2  ;;  %v805_v51 = vpop.f32.mrf.mxu3 }
  0xb1   :  { %1290 = vst [vmem:[%s2434_s3 + $0x8] sm:$0xff] %v1241_v47  ;;  %v642_v54 = vadd.f32 %v641_v50, %v1858_v12  ;;  %v806_v55 = vadd.f32 %v805_v51, %v1860_v13  ;;  %v1144_v57 = vmax.f32 %v954_v52, %v955_v53 }
  0xb3   :  { %v956_v58 = vmax.f32 %v642_v54, 0.0  ;;  %v957_v59 = vmax.f32 %v806_v55, 0.0 }
  0xb4   :  { %v316_v61 = vpop.f32.mrf.mxu0  ;;  %v480_v62 = vpop.f32.mrf.mxu1 }
  0xb5   :  { %v1193_v60 = vmax.f32 %v956_v58, %v957_v59  ;;  %1462 = vmatmul.msk.f32.gmra.mxu2 %vm129_vm1, %v33_v56  ;;  %1512 = vmatmul.msk.f32.gmra.mxu3 %vm129_vm1, %v33_v56  ;;  %v317_v0 = vadd.f32 %v316_v61, %v1852_v10  ;;  %v481_v1 = vadd.f32 %v480_v62, %v1854_v11 }
  0xb7   :  { %v1242_v63 = vmax.f32 %v1144_v57, %v1193_v60  ;;  %v958_v4 = vmax.f32 %v317_v0, 0.0  ;;  %v959_v5 = vmax.f32 %v481_v1, 0.0  ;;  %1362 = vmatmul.msk.f32.gmra.mxu0 %vm129_vm1, %v33_v56  ;;  %1412 = vmatmul.msk.f32.gmra.mxu1 %vm129_vm1, %v33_v56  ;;  %v37_v60 = vld [vmem:[%s2432_s0 + $0xb8] sm:$0xff] }
  0xb8   :  { %v644_v2 = vpop.f32.mrf.mxu2  ;;  %v808_v3 = vpop.f32.mrf.mxu3 }
  0xb9   :  { %1291 = vst [vmem:[%s2434_s3 + $0x10] sm:$0xff] %v1242_v63  ;;  %v645_v6 = vadd.f32 %v644_v2, %v1858_v12  ;;  %v809_v7 = vadd.f32 %v808_v3, %v1860_v13  ;;  %v1145_v9 = vmax.f32 %v958_v4, %v959_v5 }
  0xbb   :  { %v960_v14 = vmax.f32 %v645_v6, 0.0  ;;  %v961_v15 = vmax.f32 %v809_v7, 0.0 }
  0xbc   :  { %v319_v17 = vpop.f32.mrf.mxu0  ;;  %v483_v18 = vpop.f32.mrf.mxu1 }
  0xbd   :  { %v1194_v16 = vmax.f32 %v960_v14, %v961_v15  ;;  %1463 = vmatmul.msk.f32.gmra.mxu2 %vm129_vm1, %v34_v8  ;;  %1513 = vmatmul.msk.f32.gmra.mxu3 %vm129_vm1, %v34_v8  ;;  %v320_v20 = vadd.f32 %v319_v17, %v1852_v10  ;;  %v484_v21 = vadd.f32 %v483_v18, %v1854_v11 }
  0xbf   :  { %v1243_v19 = vmax.f32 %v1145_v9, %v1194_v16  ;;  %v962_v24 = vmax.f32 %v320_v20, 0.0  ;;  %v963_v25 = vmax.f32 %v484_v21, 0.0  ;;  %1363 = vmatmul.msk.f32.gmra.mxu0 %vm129_vm1, %v34_v8  ;;  %1413 = vmatmul.msk.f32.gmra.mxu1 %vm129_vm1, %v34_v8  ;;  %v38_v16 = vld [vmem:[%s2432_s0 + $0xc0] sm:$0xff] }
  0xc0   :  { %v647_v22 = vpop.f32.mrf.mxu2  ;;  %v811_v23 = vpop.f32.mrf.mxu3 }
  0xc1   :  { %1292 = vst [vmem:[%s2434_s3 + $0x18] sm:$0xff] %v1243_v19  ;;  %v648_v26 = vadd.f32 %v647_v22, %v1858_v12  ;;  %v812_v27 = vadd.f32 %v811_v23, %v1860_v13  ;;  %v1146_v29 = vmax.f32 %v962_v24, %v963_v25 }
  0xc3   :  { %v964_v30 = vmax.f32 %v648_v26, 0.0  ;;  %v965_v31 = vmax.f32 %v812_v27, 0.0 }
  0xc4   :  { %v322_v33 = vpop.f32.mrf.mxu0  ;;  %v486_v34 = vpop.f32.mrf.mxu1 }
  0xc5   :  { %v1195_v32 = vmax.f32 %v964_v30, %v965_v31  ;;  %1464 = vmatmul.msk.f32.gmra.mxu2 %vm129_vm1, %v35_v28  ;;  %1514 = vmatmul.msk.f32.gmra.mxu3 %vm129_vm1, %v35_v28  ;;  %v323_v36 = vadd.f32 %v322_v33, %v1852_v10  ;;  %v487_v37 = vadd.f32 %v486_v34, %v1854_v11 }
  0xc7   :  { %v1244_v35 = vmax.f32 %v1146_v29, %v1195_v32  ;;  %v966_v40 = vmax.f32 %v323_v36, 0.0  ;;  %v967_v41 = vmax.f32 %v487_v37, 0.0  ;;  %1364 = vmatmul.msk.f32.gmra.mxu0 %vm129_vm1, %v35_v28  ;;  %1414 = vmatmul.msk.f32.gmra.mxu1 %vm129_vm1, %v35_v28  ;;  %v39_v32 = vld [vmem:[%s2432_s0 + $0xc8] sm:$0xff] }
  0xc8   :  { %v650_v38 = vpop.f32.mrf.mxu2  ;;  %v814_v39 = vpop.f32.mrf.mxu3 }
  0xc9   :  { %1293 = vst [vmem:[%s2434_s3 + $0x20] sm:$0xff] %v1244_v35  ;;  %v651_v42 = vadd.f32 %v650_v38, %v1858_v12  ;;  %v815_v43 = vadd.f32 %v814_v39, %v1860_v13  ;;  %v1147_v45 = vmax.f32 %v966_v40, %v967_v41 }
  0xcb   :  { %v968_v46 = vmax.f32 %v651_v42, 0.0  ;;  %v969_v47 = vmax.f32 %v815_v43, 0.0 }
  0xcc   :  { %v325_v49 = vpop.f32.mrf.mxu0  ;;  %v489_v50 = vpop.f32.mrf.mxu1 }
  0xcd   :  { %v1196_v48 = vmax.f32 %v968_v46, %v969_v47  ;;  %1465 = vmatmul.msk.f32.gmra.mxu2 %vm129_vm1, %v36_v44  ;;  %1515 = vmatmul.msk.f32.gmra.mxu3 %vm129_vm1, %v36_v44  ;;  %v326_v52 = vadd.f32 %v325_v49, %v1852_v10  ;;  %v490_v53 = vadd.f32 %v489_v50, %v1854_v11 }
  0xcf   :  { %v1245_v51 = vmax.f32 %v1147_v45, %v1196_v48  ;;  %v970_v56 = vmax.f32 %v326_v52, 0.0  ;;  %v971_v57 = vmax.f32 %v490_v53, 0.0  ;;  %1365 = vmatmul.msk.f32.gmra.mxu0 %vm129_vm1, %v36_v44  ;;  %1415 = vmatmul.msk.f32.gmra.mxu1 %vm129_vm1, %v36_v44  ;;  %v40_v48 = vld [vmem:[%s2432_s0 + $0xd0] sm:$0xff] }
  0xd0   :  { %v653_v54 = vpop.f32.mrf.mxu2  ;;  %v817_v55 = vpop.f32.mrf.mxu3 }
  0xd1   :  { %1294 = vst [vmem:[%s2434_s3 + $0x28] sm:$0xff] %v1245_v51  ;;  %v654_v58 = vadd.f32 %v653_v54, %v1858_v12  ;;  %v818_v59 = vadd.f32 %v817_v55, %v1860_v13  ;;  %v1148_v61 = vmax.f32 %v970_v56, %v971_v57 }
  0xd3   :  { %v972_v62 = vmax.f32 %v654_v58, 0.0  ;;  %v973_v63 = vmax.f32 %v818_v59, 0.0 }
  0xd4   :  { %v328_v1 = vpop.f32.mrf.mxu0  ;;  %v492_v2 = vpop.f32.mrf.mxu1 }
  0xd5   :  { %v1197_v0 = vmax.f32 %v972_v62, %v973_v63  ;;  %1466 = vmatmul.msk.f32.gmra.mxu2 %vm129_vm1, %v37_v60  ;;  %1516 = vmatmul.msk.f32.gmra.mxu3 %vm129_vm1, %v37_v60  ;;  %v329_v4 = vadd.f32 %v328_v1, %v1852_v10  ;;  %v493_v5 = vadd.f32 %v492_v2, %v1854_v11 }
  0xd7   :  { %v1246_v3 = vmax.f32 %v1148_v61, %v1197_v0  ;;  %v974_v8 = vmax.f32 %v329_v4, 0.0  ;;  %v975_v9 = vmax.f32 %v493_v5, 0.0  ;;  %1366 = vmatmul.msk.f32.gmra.mxu0 %vm129_vm1, %v37_v60  ;;  %1416 = vmatmul.msk.f32.gmra.mxu1 %vm129_vm1, %v37_v60  ;;  %v41_v0 = vld [vmem:[%s2432_s0 + $0xd8] sm:$0xff] }
  0xd8   :  { %v656_v6 = vpop.f32.mrf.mxu2  ;;  %v820_v7 = vpop.f32.mrf.mxu3 }
  0xd9   :  { %1295 = vst [vmem:[%s2434_s3 + $0x30] sm:$0xff] %v1246_v3  ;;  %v657_v14 = vadd.f32 %v656_v6, %v1858_v12  ;;  %v821_v15 = vadd.f32 %v820_v7, %v1860_v13  ;;  %v1149_v17 = vmax.f32 %v974_v8, %v975_v9 }
  0xdb   :  { %v976_v18 = vmax.f32 %v657_v14, 0.0  ;;  %v977_v19 = vmax.f32 %v821_v15, 0.0 }
  0xdc   :  { %v331_v21 = vpop.f32.mrf.mxu0  ;;  %v495_v22 = vpop.f32.mrf.mxu1 }
  0xdd   :  { %v1198_v20 = vmax.f32 %v976_v18, %v977_v19  ;;  %1467 = vmatmul.msk.f32.gmra.mxu2 %vm129_vm1, %v38_v16  ;;  %1517 = vmatmul.msk.f32.gmra.mxu3 %vm129_vm1, %v38_v16  ;;  %v332_v24 = vadd.f32 %v331_v21, %v1852_v10  ;;  %v496_v25 = vadd.f32 %v495_v22, %v1854_v11 }
  0xdf   :  { %v1247_v23 = vmax.f32 %v1149_v17, %v1198_v20  ;;  %v978_v28 = vmax.f32 %v332_v24, 0.0  ;;  %v979_v29 = vmax.f32 %v496_v25, 0.0  ;;  %1367 = vmatmul.msk.f32.gmra.mxu0 %vm129_vm1, %v38_v16  ;;  %1417 = vmatmul.msk.f32.gmra.mxu1 %vm129_vm1, %v38_v16  ;;  %v42_v20 = vld [vmem:[%s2432_s0 + $0xe0] sm:$0xff] }
  0xe0   :  { %v659_v26 = vpop.f32.mrf.mxu2  ;;  %v823_v27 = vpop.f32.mrf.mxu3 }
  0xe1   :  { %1296 = vst [vmem:[%s2434_s3 + $0x38] sm:$0xff] %v1247_v23  ;;  %v660_v30 = vadd.f32 %v659_v26, %v1858_v12  ;;  %v824_v31 = vadd.f32 %v823_v27, %v1860_v13  ;;  %v1150_v33 = vmax.f32 %v978_v28, %v979_v29 }
  0xe3   :  { %v980_v34 = vmax.f32 %v660_v30, 0.0  ;;  %v981_v35 = vmax.f32 %v824_v31, 0.0 }
  0xe4   :  { %v334_v37 = vpop.f32.mrf.mxu0  ;;  %v498_v38 = vpop.f32.mrf.mxu1 }
  0xe5   :  { %v1199_v36 = vmax.f32 %v980_v34, %v981_v35  ;;  %1468 = vmatmul.msk.f32.gmra.mxu2 %vm129_vm1, %v39_v32  ;;  %1518 = vmatmul.msk.f32.gmra.mxu3 %vm129_vm1, %v39_v32  ;;  %v335_v40 = vadd.f32 %v334_v37, %v1852_v10  ;;  %v499_v41 = vadd.f32 %v498_v38, %v1854_v11 }
  0xe7   :  { %v1248_v39 = vmax.f32 %v1150_v33, %v1199_v36  ;;  %v982_v44 = vmax.f32 %v335_v40, 0.0  ;;  %v983_v45 = vmax.f32 %v499_v41, 0.0  ;;  %1368 = vmatmul.msk.f32.gmra.mxu0 %vm129_vm1, %v39_v32  ;;  %1418 = vmatmul.msk.f32.gmra.mxu1 %vm129_vm1, %v39_v32  ;;  %v43_v36 = vld [vmem:[%s2432_s0 + $0xe8] sm:$0xff] }
  0xe8   :  { %v662_v42 = vpop.f32.mrf.mxu2  ;;  %v826_v43 = vpop.f32.mrf.mxu3 }
  0xe9   :  { %1297 = vst [vmem:[%s2434_s3 + $0x40] sm:$0xff] %v1248_v39  ;;  %v663_v46 = vadd.f32 %v662_v42, %v1858_v12  ;;  %v827_v47 = vadd.f32 %v826_v43, %v1860_v13  ;;  %v1151_v49 = vmax.f32 %v982_v44, %v983_v45 }
  0xeb   :  { %v984_v50 = vmax.f32 %v663_v46, 0.0  ;;  %v985_v51 = vmax.f32 %v827_v47, 0.0 }
  0xec   :  { %v337_v53 = vpop.f32.mrf.mxu0  ;;  %v501_v54 = vpop.f32.mrf.mxu1 }
  0xed   :  { %v1200_v52 = vmax.f32 %v984_v50, %v985_v51  ;;  %1469 = vmatmul.msk.f32.gmra.mxu2 %vm129_vm1, %v40_v48  ;;  %1519 = vmatmul.msk.f32.gmra.mxu3 %vm129_vm1, %v40_v48  ;;  %v338_v56 = vadd.f32 %v337_v53, %v1852_v10  ;;  %v502_v57 = vadd.f32 %v501_v54, %v1854_v11 }
  0xef   :  { %v1249_v55 = vmax.f32 %v1151_v49, %v1200_v52  ;;  %v986_v60 = vmax.f32 %v338_v56, 0.0  ;;  %v987_v61 = vmax.f32 %v502_v57, 0.0  ;;  %1369 = vmatmul.msk.f32.gmra.mxu0 %vm129_vm1, %v40_v48  ;;  %1419 = vmatmul.msk.f32.gmra.mxu1 %vm129_vm1, %v40_v48  ;;  %v44_v52 = vld [vmem:[%s2432_s0 + $0xf0] sm:$0xff] }
  0xf0   :  { %v665_v58 = vpop.f32.mrf.mxu2  ;;  %v829_v59 = vpop.f32.mrf.mxu3 }
  0xf1   :  { %1298 = vst [vmem:[%s2434_s3 + $0x48] sm:$0xff] %v1249_v55  ;;  %v666_v62 = vadd.f32 %v665_v58, %v1858_v12  ;;  %v830_v63 = vadd.f32 %v829_v59, %v1860_v13  ;;  %v1152_v1 = vmax.f32 %v986_v60, %v987_v61 }
  0xf3   :  { %v988_v2 = vmax.f32 %v666_v62, 0.0  ;;  %v989_v3 = vmax.f32 %v830_v63, 0.0 }
  0xf4   :  { %v340_v5 = vpop.f32.mrf.mxu0  ;;  %v504_v6 = vpop.f32.mrf.mxu1 }
  0xf5   :  { %v1201_v4 = vmax.f32 %v988_v2, %v989_v3  ;;  %1470 = vmatmul.msk.f32.gmra.mxu2 %vm129_vm1, %v41_v0  ;;  %1520 = vmatmul.msk.f32.gmra.mxu3 %vm129_vm1, %v41_v0  ;;  %v341_v8 = vadd.f32 %v340_v5, %v1852_v10  ;;  %v505_v9 = vadd.f32 %v504_v6, %v1854_v11 }
  0xf7   :  { %v1250_v7 = vmax.f32 %v1152_v1, %v1201_v4  ;;  %v990_v16 = vmax.f32 %v341_v8, 0.0  ;;  %v991_v17 = vmax.f32 %v505_v9, 0.0  ;;  %1370 = vmatmul.msk.f32.gmra.mxu0 %vm129_vm1, %v41_v0  ;;  %1420 = vmatmul.msk.f32.gmra.mxu1 %vm129_vm1, %v41_v0  ;;  %v45_v4 = vld [vmem:[%s2432_s0 + $0xf8] sm:$0xff] }
  0xf8   :  { %v668_v14 = vpop.f32.mrf.mxu2  ;;  %v832_v15 = vpop.f32.mrf.mxu3 }
  0xf9   :  { %1299 = vst [vmem:[%s2434_s3 + $0x50] sm:$0xff] %v1250_v7  ;;  %v669_v18 = vadd.f32 %v668_v14, %v1858_v12  ;;  %v833_v19 = vadd.f32 %v832_v15, %v1860_v13  ;;  %v1153_v21 = vmax.f32 %v990_v16, %v991_v17 }
  0xfb   :  { %v992_v22 = vmax.f32 %v669_v18, 0.0  ;;  %v993_v23 = vmax.f32 %v833_v19, 0.0 }
  0xfc   :  { %v343_v25 = vpop.f32.mrf.mxu0  ;;  %v507_v26 = vpop.f32.mrf.mxu1 }
  0xfd   :  { %v1202_v24 = vmax.f32 %v992_v22, %v993_v23  ;;  %1471 = vmatmul.msk.f32.gmra.mxu2 %vm129_vm1, %v42_v20  ;;  %1521 = vmatmul.msk.f32.gmra.mxu3 %vm129_vm1, %v42_v20  ;;  %v344_v28 = vadd.f32 %v343_v25, %v1852_v10  ;;  %v508_v29 = vadd.f32 %v507_v26, %v1854_v11 }
  0xff   :  { %v1251_v27 = vmax.f32 %v1153_v21, %v1202_v24  ;;  %v994_v32 = vmax.f32 %v344_v28, 0.0  ;;  %v995_v33 = vmax.f32 %v508_v29, 0.0  ;;  %1371 = vmatmul.msk.f32.gmra.mxu0 %vm129_vm1, %v42_v20  ;;  %1421 = vmatmul.msk.f32.gmra.mxu1 %vm129_vm1, %v42_v20  ;;  %v46_v24 = vld [vmem:[%s2432_s0 + $0x100] sm:$0xff] }
 0x100   :  { %v671_v30 = vpop.f32.mrf.mxu2  ;;  %v835_v31 = vpop.f32.mrf.mxu3 }
 0x101   :  { %1300 = vst [vmem:[%s2434_s3 + $0x58] sm:$0xff] %v1251_v27  ;;  %v672_v34 = vadd.f32 %v671_v30, %v1858_v12  ;;  %v836_v35 = vadd.f32 %v835_v31, %v1860_v13  ;;  %v1154_v37 = vmax.f32 %v994_v32, %v995_v33 }
 0x103   :  { %v996_v38 = vmax.f32 %v672_v34, 0.0  ;;  %v997_v39 = vmax.f32 %v836_v35, 0.0 }
 0x104   :  { %v346_v41 = vpop.f32.mrf.mxu0  ;;  %v510_v42 = vpop.f32.mrf.mxu1 }
 0x105   :  { %v1203_v40 = vmax.f32 %v996_v38, %v997_v39  ;;  %1472 = vmatmul.msk.f32.gmra.mxu2 %vm129_vm1, %v43_v36  ;;  %1522 = vmatmul.msk.f32.gmra.mxu3 %vm129_vm1, %v43_v36  ;;  %v347_v44 = vadd.f32 %v346_v41, %v1852_v10  ;;  %v511_v45 = vadd.f32 %v510_v42, %v1854_v11 }
 0x107   :  { %v1252_v43 = vmax.f32 %v1154_v37, %v1203_v40  ;;  %v998_v48 = vmax.f32 %v347_v44, 0.0  ;;  %v999_v49 = vmax.f32 %v511_v45, 0.0  ;;  %1372 = vmatmul.msk.f32.gmra.mxu0 %vm129_vm1, %v43_v36  ;;  %1422 = vmatmul.msk.f32.gmra.mxu1 %vm129_vm1, %v43_v36  ;;  %v47_v40 = vld [vmem:[%s2432_s0 + $0x108] sm:$0xff] }
 0x108   :  { %v674_v46 = vpop.f32.mrf.mxu2  ;;  %v838_v47 = vpop.f32.mrf.mxu3 }
 0x109   :  { %1301 = vst [vmem:[%s2434_s3 + $0x60] sm:$0xff] %v1252_v43  ;;  %v675_v50 = vadd.f32 %v674_v46, %v1858_v12  ;;  %v839_v51 = vadd.f32 %v838_v47, %v1860_v13  ;;  %v1155_v53 = vmax.f32 %v998_v48, %v999_v49 }
 0x10b   :  { %v1000_v54 = vmax.f32 %v675_v50, 0.0  ;;  %v1001_v55 = vmax.f32 %v839_v51, 0.0 }
 0x10c   :  { %v349_v57 = vpop.f32.mrf.mxu0  ;;  %v513_v58 = vpop.f32.mrf.mxu1 }
 0x10d   :  { %v1204_v56 = vmax.f32 %v1000_v54, %v1001_v55  ;;  %1473 = vmatmul.msk.f32.gmra.mxu2 %vm129_vm1, %v44_v52  ;;  %1523 = vmatmul.msk.f32.gmra.mxu3 %vm129_vm1, %v44_v52  ;;  %v350_v60 = vadd.f32 %v349_v57, %v1852_v10  ;;  %v514_v61 = vadd.f32 %v513_v58, %v1854_v11 }
 0x10f   :  { %v1253_v59 = vmax.f32 %v1155_v53, %v1204_v56  ;;  %v1002_v0 = vmax.f32 %v350_v60, 0.0  ;;  %v1003_v1 = vmax.f32 %v514_v61, 0.0  ;;  %1373 = vmatmul.msk.f32.gmra.mxu0 %vm129_vm1, %v44_v52  ;;  %1423 = vmatmul.msk.f32.gmra.mxu1 %vm129_vm1, %v44_v52  ;;  %v48_v56 = vld [vmem:[%s2432_s0 + $0x110] sm:$0xff] }
 0x110   :  { %v677_v62 = vpop.f32.mrf.mxu2  ;;  %v841_v63 = vpop.f32.mrf.mxu3 }
 0x111   :  { %1302 = vst [vmem:[%s2434_s3 + $0x68] sm:$0xff] %v1253_v59  ;;  %v678_v2 = vadd.f32 %v677_v62, %v1858_v12  ;;  %v842_v3 = vadd.f32 %v841_v63, %v1860_v13  ;;  %v1156_v5 = vmax.f32 %v1002_v0, %v1003_v1 }
 0x113   :  { %v1004_v6 = vmax.f32 %v678_v2, 0.0  ;;  %v1005_v7 = vmax.f32 %v842_v3, 0.0 }
 0x114   :  { %v352_v9 = vpop.f32.mrf.mxu0  ;;  %v516_v14 = vpop.f32.mrf.mxu1 }
 0x115   :  { %v1205_v8 = vmax.f32 %v1004_v6, %v1005_v7  ;;  %1474 = vmatmul.msk.f32.gmra.mxu2 %vm129_vm1, %v45_v4  ;;  %1524 = vmatmul.msk.f32.gmra.mxu3 %vm129_vm1, %v45_v4  ;;  %v353_v16 = vadd.f32 %v352_v9, %v1852_v10  ;;  %v517_v17 = vadd.f32 %v516_v14, %v1854_v11 }
 0x117   :  { %v1254_v15 = vmax.f32 %v1156_v5, %v1205_v8  ;;  %v1006_v20 = vmax.f32 %v353_v16, 0.0  ;;  %v1007_v21 = vmax.f32 %v517_v17, 0.0  ;;  %1374 = vmatmul.msk.f32.gmra.mxu0 %vm129_vm1, %v45_v4  ;;  %1424 = vmatmul.msk.f32.gmra.mxu1 %vm129_vm1, %v45_v4  ;;  %v49_v8 = vld [vmem:[%s2432_s0 + $0x118] sm:$0xff] }
 0x118   :  { %v680_v18 = vpop.f32.mrf.mxu2  ;;  %v844_v19 = vpop.f32.mrf.mxu3 }
 0x119   :  { %1303 = vst [vmem:[%s2434_s3 + $0x70] sm:$0xff] %v1254_v15  ;;  %v681_v22 = vadd.f32 %v680_v18, %v1858_v12  ;;  %v845_v23 = vadd.f32 %v844_v19, %v1860_v13  ;;  %v1157_v25 = vmax.f32 %v1006_v20, %v1007_v21 }
 0x11b   :  { %v1008_v26 = vmax.f32 %v681_v22, 0.0  ;;  %v1009_v27 = vmax.f32 %v845_v23, 0.0 }
 0x11c   :  { %v355_v29 = vpop.f32.mrf.mxu0  ;;  %v519_v30 = vpop.f32.mrf.mxu1 }
 0x11d   :  { %v1206_v28 = vmax.f32 %v1008_v26, %v1009_v27  ;;  %1475 = vmatmul.msk.f32.gmra.mxu2 %vm129_vm1, %v46_v24  ;;  %1525 = vmatmul.msk.f32.gmra.mxu3 %vm129_vm1, %v46_v24  ;;  %v356_v32 = vadd.f32 %v355_v29, %v1852_v10  ;;  %v520_v33 = vadd.f32 %v519_v30, %v1854_v11 }
 0x11f   :  { %v1255_v31 = vmax.f32 %v1157_v25, %v1206_v28  ;;  %v1010_v36 = vmax.f32 %v356_v32, 0.0  ;;  %v1011_v37 = vmax.f32 %v520_v33, 0.0  ;;  %1375 = vmatmul.msk.f32.gmra.mxu0 %vm129_vm1, %v46_v24  ;;  %1425 = vmatmul.msk.f32.gmra.mxu1 %vm129_vm1, %v46_v24  ;;  %v50_v28 = vld [vmem:[%s2432_s0 + $0x120] sm:$0xff] }
 0x120   :  { %v683_v34 = vpop.f32.mrf.mxu2  ;;  %v847_v35 = vpop.f32.mrf.mxu3 }
 0x121   :  { %1304 = vst [vmem:[%s2434_s3 + $0x78] sm:$0xff] %v1255_v31  ;;  %v684_v38 = vadd.f32 %v683_v34, %v1858_v12  ;;  %v848_v39 = vadd.f32 %v847_v35, %v1860_v13  ;;  %v1158_v41 = vmax.f32 %v1010_v36, %v1011_v37 }
 0x123   :  { %v1012_v42 = vmax.f32 %v684_v38, 0.0  ;;  %v1013_v43 = vmax.f32 %v848_v39, 0.0 }
 0x124   :  { %v358_v45 = vpop.f32.mrf.mxu0  ;;  %v522_v46 = vpop.f32.mrf.mxu1 }
 0x125   :  { %v1207_v44 = vmax.f32 %v1012_v42, %v1013_v43  ;;  %1476 = vmatmul.msk.f32.gmra.mxu2 %vm129_vm1, %v47_v40  ;;  %1526 = vmatmul.msk.f32.gmra.mxu3 %vm129_vm1, %v47_v40  ;;  %v359_v48 = vadd.f32 %v358_v45, %v1852_v10  ;;  %v523_v49 = vadd.f32 %v522_v46, %v1854_v11 }
 0x127   :  { %v1256_v47 = vmax.f32 %v1158_v41, %v1207_v44  ;;  %v1014_v52 = vmax.f32 %v359_v48, 0.0  ;;  %v1015_v53 = vmax.f32 %v523_v49, 0.0  ;;  %1376 = vmatmul.msk.f32.gmra.mxu0 %vm129_vm1, %v47_v40  ;;  %1426 = vmatmul.msk.f32.gmra.mxu1 %vm129_vm1, %v47_v40  ;;  %v51_v44 = vld [vmem:[%s2432_s0 + $0x128] sm:$0xff] }
 0x128   :  { %v686_v50 = vpop.f32.mrf.mxu2  ;;  %v850_v51 = vpop.f32.mrf.mxu3 }
 0x129   :  { %1305 = vst [vmem:[%s2434_s3 + $0x80] sm:$0xff] %v1256_v47  ;;  %v687_v54 = vadd.f32 %v686_v50, %v1858_v12  ;;  %v851_v55 = vadd.f32 %v850_v51, %v1860_v13  ;;  %v1159_v57 = vmax.f32 %v1014_v52, %v1015_v53 }
 0x12b   :  { %v1016_v58 = vmax.f32 %v687_v54, 0.0  ;;  %v1017_v59 = vmax.f32 %v851_v55, 0.0 }
 0x12c   :  { %v361_v61 = vpop.f32.mrf.mxu0  ;;  %v525_v62 = vpop.f32.mrf.mxu1 }
 0x12d   :  { %v1208_v60 = vmax.f32 %v1016_v58, %v1017_v59  ;;  %1477 = vmatmul.msk.f32.gmra.mxu2 %vm129_vm1, %v48_v56  ;;  %1527 = vmatmul.msk.f32.gmra.mxu3 %vm129_vm1, %v48_v56  ;;  %v362_v0 = vadd.f32 %v361_v61, %v1852_v10  ;;  %v526_v1 = vadd.f32 %v525_v62, %v1854_v11 }
 0x12f   :  { %v1257_v63 = vmax.f32 %v1159_v57, %v1208_v60  ;;  %v1018_v4 = vmax.f32 %v362_v0, 0.0  ;;  %v1019_v5 = vmax.f32 %v526_v1, 0.0  ;;  %1377 = vmatmul.msk.f32.gmra.mxu0 %vm129_vm1, %v48_v56  ;;  %1427 = vmatmul.msk.f32.gmra.mxu1 %vm129_vm1, %v48_v56  ;;  %v52_v60 = vld [vmem:[%s2432_s0 + $0x130] sm:$0xff] }
 0x130   :  { %v689_v2 = vpop.f32.mrf.mxu2  ;;  %v853_v3 = vpop.f32.mrf.mxu3 }
 0x131   :  { %1306 = vst [vmem:[%s2434_s3 + $0x88] sm:$0xff] %v1257_v63  ;;  %v690_v6 = vadd.f32 %v689_v2, %v1858_v12  ;;  %v854_v7 = vadd.f32 %v853_v3, %v1860_v13  ;;  %v1160_v9 = vmax.f32 %v1018_v4, %v1019_v5 }
 0x133   :  { %v1020_v14 = vmax.f32 %v690_v6, 0.0  ;;  %v1021_v15 = vmax.f32 %v854_v7, 0.0 }
 0x134   :  { %v364_v17 = vpop.f32.mrf.mxu0  ;;  %v528_v18 = vpop.f32.mrf.mxu1 }
 0x135   :  { %v1209_v16 = vmax.f32 %v1020_v14, %v1021_v15  ;;  %1478 = vmatmul.msk.f32.gmra.mxu2 %vm129_vm1, %v49_v8  ;;  %1528 = vmatmul.msk.f32.gmra.mxu3 %vm129_vm1, %v49_v8  ;;  %v365_v20 = vadd.f32 %v364_v17, %v1852_v10  ;;  %v529_v21 = vadd.f32 %v528_v18, %v1854_v11 }
 0x137   :  { %v1258_v19 = vmax.f32 %v1160_v9, %v1209_v16  ;;  %v1022_v24 = vmax.f32 %v365_v20, 0.0  ;;  %v1023_v25 = vmax.f32 %v529_v21, 0.0  ;;  %1378 = vmatmul.msk.f32.gmra.mxu0 %vm129_vm1, %v49_v8  ;;  %1428 = vmatmul.msk.f32.gmra.mxu1 %vm129_vm1, %v49_v8  ;;  %v53_v16 = vld [vmem:[%s2432_s0 + $0x138] sm:$0xff] }
 0x138   :  { %v692_v22 = vpop.f32.mrf.mxu2  ;;  %v856_v23 = vpop.f32.mrf.mxu3 }
 0x139   :  { %1307 = vst [vmem:[%s2434_s3 + $0x90] sm:$0xff] %v1258_v19  ;;  %v693_v26 = vadd.f32 %v692_v22, %v1858_v12  ;;  %v857_v27 = vadd.f32 %v856_v23, %v1860_v13  ;;  %v1161_v29 = vmax.f32 %v1022_v24, %v1023_v25 }
 0x13b   :  { %v1024_v30 = vmax.f32 %v693_v26, 0.0  ;;  %v1025_v31 = vmax.f32 %v857_v27, 0.0 }
 0x13c   :  { %v367_v33 = vpop.f32.mrf.mxu0  ;;  %v531_v34 = vpop.f32.mrf.mxu1 }
 0x13d   :  { %v1210_v32 = vmax.f32 %v1024_v30, %v1025_v31  ;;  %1479 = vmatmul.msk.f32.gmra.mxu2 %vm129_vm1, %v50_v28  ;;  %1529 = vmatmul.msk.f32.gmra.mxu3 %vm129_vm1, %v50_v28  ;;  %v368_v36 = vadd.f32 %v367_v33, %v1852_v10  ;;  %v532_v37 = vadd.f32 %v531_v34, %v1854_v11 }
 0x13f   :  { %v1259_v35 = vmax.f32 %v1161_v29, %v1210_v32  ;;  %v1026_v40 = vmax.f32 %v368_v36, 0.0  ;;  %v1027_v41 = vmax.f32 %v532_v37, 0.0  ;;  %1379 = vmatmul.msk.f32.gmra.mxu0 %vm129_vm1, %v50_v28  ;;  %1429 = vmatmul.msk.f32.gmra.mxu1 %vm129_vm1, %v50_v28  ;;  %v54_v32 = vld [vmem:[%s2432_s0 + $0x140] sm:$0xff] }
 0x140   :  { %v695_v38 = vpop.f32.mrf.mxu2  ;;  %v859_v39 = vpop.f32.mrf.mxu3 }
 0x141   :  { %1308 = vst [vmem:[%s2434_s3 + $0x98] sm:$0xff] %v1259_v35  ;;  %v696_v42 = vadd.f32 %v695_v38, %v1858_v12  ;;  %v860_v43 = vadd.f32 %v859_v39, %v1860_v13  ;;  %v1162_v45 = vmax.f32 %v1026_v40, %v1027_v41 }
 0x143   :  { %v1028_v46 = vmax.f32 %v696_v42, 0.0  ;;  %v1029_v47 = vmax.f32 %v860_v43, 0.0 }
 0x144   :  { %v370_v49 = vpop.f32.mrf.mxu0  ;;  %v534_v50 = vpop.f32.mrf.mxu1 }
 0x145   :  { %v1211_v48 = vmax.f32 %v1028_v46, %v1029_v47  ;;  %1480 = vmatmul.msk.f32.gmra.mxu2 %vm129_vm1, %v51_v44  ;;  %1530 = vmatmul.msk.f32.gmra.mxu3 %vm129_vm1, %v51_v44  ;;  %v371_v52 = vadd.f32 %v370_v49, %v1852_v10  ;;  %v535_v53 = vadd.f32 %v534_v50, %v1854_v11 }
 0x147   :  { %v1260_v51 = vmax.f32 %v1162_v45, %v1211_v48  ;;  %v1030_v56 = vmax.f32 %v371_v52, 0.0  ;;  %v1031_v57 = vmax.f32 %v535_v53, 0.0  ;;  %1380 = vmatmul.msk.f32.gmra.mxu0 %vm129_vm1, %v51_v44  ;;  %1430 = vmatmul.msk.f32.gmra.mxu1 %vm129_vm1, %v51_v44  ;;  %v55_v48 = vld [vmem:[%s2432_s0 + $0x148] sm:$0xff] }
 0x148   :  { %v698_v54 = vpop.f32.mrf.mxu2  ;;  %v862_v55 = vpop.f32.mrf.mxu3 }
 0x149   :  { %1309 = vst [vmem:[%s2434_s3 + $0xa0] sm:$0xff] %v1260_v51  ;;  %v699_v58 = vadd.f32 %v698_v54, %v1858_v12  ;;  %v863_v59 = vadd.f32 %v862_v55, %v1860_v13  ;;  %v1163_v61 = vmax.f32 %v1030_v56, %v1031_v57 }
 0x14b   :  { %v1032_v62 = vmax.f32 %v699_v58, 0.0  ;;  %v1033_v63 = vmax.f32 %v863_v59, 0.0 }
 0x14c   :  { %v373_v1 = vpop.f32.mrf.mxu0  ;;  %v537_v2 = vpop.f32.mrf.mxu1 }
 0x14d   :  { %v1212_v0 = vmax.f32 %v1032_v62, %v1033_v63  ;;  %1481 = vmatmul.msk.f32.gmra.mxu2 %vm129_vm1, %v52_v60  ;;  %1531 = vmatmul.msk.f32.gmra.mxu3 %vm129_vm1, %v52_v60  ;;  %v374_v4 = vadd.f32 %v373_v1, %v1852_v10  ;;  %v538_v5 = vadd.f32 %v537_v2, %v1854_v11 }
 0x14f   :  { %v1261_v3 = vmax.f32 %v1163_v61, %v1212_v0  ;;  %v1034_v8 = vmax.f32 %v374_v4, 0.0  ;;  %v1035_v9 = vmax.f32 %v538_v5, 0.0  ;;  %1381 = vmatmul.msk.f32.gmra.mxu0 %vm129_vm1, %v52_v60  ;;  %1431 = vmatmul.msk.f32.gmra.mxu1 %vm129_vm1, %v52_v60  ;;  %v56_v0 = vld [vmem:[%s2432_s0 + $0x150] sm:$0xff] }
 0x150   :  { %v701_v6 = vpop.f32.mrf.mxu2  ;;  %v865_v7 = vpop.f32.mrf.mxu3 }
 0x151   :  { %1310 = vst [vmem:[%s2434_s3 + $0xa8] sm:$0xff] %v1261_v3  ;;  %v702_v14 = vadd.f32 %v701_v6, %v1858_v12  ;;  %v866_v15 = vadd.f32 %v865_v7, %v1860_v13  ;;  %v1164_v17 = vmax.f32 %v1034_v8, %v1035_v9 }
 0x153   :  { %v1036_v18 = vmax.f32 %v702_v14, 0.0  ;;  %v1037_v19 = vmax.f32 %v866_v15, 0.0 }
 0x154   :  { %v376_v21 = vpop.f32.mrf.mxu0  ;;  %v540_v22 = vpop.f32.mrf.mxu1 }
 0x155   :  { %v1213_v20 = vmax.f32 %v1036_v18, %v1037_v19  ;;  %1482 = vmatmul.msk.f32.gmra.mxu2 %vm129_vm1, %v53_v16  ;;  %1532 = vmatmul.msk.f32.gmra.mxu3 %vm129_vm1, %v53_v16  ;;  %v377_v24 = vadd.f32 %v376_v21, %v1852_v10  ;;  %v541_v25 = vadd.f32 %v540_v22, %v1854_v11 }
 0x157   :  { %v1262_v23 = vmax.f32 %v1164_v17, %v1213_v20  ;;  %v1038_v28 = vmax.f32 %v377_v24, 0.0  ;;  %v1039_v29 = vmax.f32 %v541_v25, 0.0  ;;  %1382 = vmatmul.msk.f32.gmra.mxu0 %vm129_vm1, %v53_v16  ;;  %1432 = vmatmul.msk.f32.gmra.mxu1 %vm129_vm1, %v53_v16  ;;  %v57_v20 = vld [vmem:[%s2432_s0 + $0x158] sm:$0xff] }
 0x158   :  { %v704_v26 = vpop.f32.mrf.mxu2  ;;  %v868_v27 = vpop.f32.mrf.mxu3 }
 0x159   :  { %1311 = vst [vmem:[%s2434_s3 + $0xb0] sm:$0xff] %v1262_v23  ;;  %v705_v30 = vadd.f32 %v704_v26, %v1858_v12  ;;  %v869_v31 = vadd.f32 %v868_v27, %v1860_v13  ;;  %v1165_v33 = vmax.f32 %v1038_v28, %v1039_v29 }
 0x15b   :  { %v1040_v34 = vmax.f32 %v705_v30, 0.0  ;;  %v1041_v35 = vmax.f32 %v869_v31, 0.0 }
 0x15c   :  { %v379_v37 = vpop.f32.mrf.mxu0  ;;  %v543_v38 = vpop.f32.mrf.mxu1 }
 0x15d   :  { %v1214_v36 = vmax.f32 %v1040_v34, %v1041_v35  ;;  %1483 = vmatmul.msk.f32.gmra.mxu2 %vm129_vm1, %v54_v32  ;;  %1533 = vmatmul.msk.f32.gmra.mxu3 %vm129_vm1, %v54_v32  ;;  %v380_v40 = vadd.f32 %v379_v37, %v1852_v10  ;;  %v544_v41 = vadd.f32 %v543_v38, %v1854_v11 }
 0x15f   :  { %v1263_v39 = vmax.f32 %v1165_v33, %v1214_v36  ;;  %v1042_v44 = vmax.f32 %v380_v40, 0.0  ;;  %v1043_v45 = vmax.f32 %v544_v41, 0.0  ;;  %1383 = vmatmul.msk.f32.gmra.mxu0 %vm129_vm1, %v54_v32  ;;  %1433 = vmatmul.msk.f32.gmra.mxu1 %vm129_vm1, %v54_v32  ;;  %v58_v36 = vld [vmem:[%s2432_s0 + $0x160] sm:$0xff] }
 0x160   :  { %v707_v42 = vpop.f32.mrf.mxu2  ;;  %v871_v43 = vpop.f32.mrf.mxu3 }
 0x161   :  { %1312 = vst [vmem:[%s2434_s3 + $0xb8] sm:$0xff] %v1263_v39  ;;  %v708_v46 = vadd.f32 %v707_v42, %v1858_v12  ;;  %v872_v47 = vadd.f32 %v871_v43, %v1860_v13  ;;  %v1166_v49 = vmax.f32 %v1042_v44, %v1043_v45 }
 0x163   :  { %v1044_v50 = vmax.f32 %v708_v46, 0.0  ;;  %v1045_v51 = vmax.f32 %v872_v47, 0.0 }
 0x164   :  { %v382_v53 = vpop.f32.mrf.mxu0  ;;  %v546_v54 = vpop.f32.mrf.mxu1 }
 0x165   :  { %v1215_v52 = vmax.f32 %v1044_v50, %v1045_v51  ;;  %1484 = vmatmul.msk.f32.gmra.mxu2 %vm129_vm1, %v55_v48  ;;  %1534 = vmatmul.msk.f32.gmra.mxu3 %vm129_vm1, %v55_v48  ;;  %v383_v56 = vadd.f32 %v382_v53, %v1852_v10  ;;  %v547_v57 = vadd.f32 %v546_v54, %v1854_v11 }
 0x167   :  { %v1264_v55 = vmax.f32 %v1166_v49, %v1215_v52  ;;  %v1046_v60 = vmax.f32 %v383_v56, 0.0  ;;  %v1047_v61 = vmax.f32 %v547_v57, 0.0  ;;  %1384 = vmatmul.msk.f32.gmra.mxu0 %vm129_vm1, %v55_v48  ;;  %1434 = vmatmul.msk.f32.gmra.mxu1 %vm129_vm1, %v55_v48  ;;  %v59_v52 = vld [vmem:[%s2432_s0 + $0x168] sm:$0xff] }
 0x168   :  { %v710_v58 = vpop.f32.mrf.mxu2  ;;  %v874_v59 = vpop.f32.mrf.mxu3 }
 0x169   :  { %1313 = vst [vmem:[%s2434_s3 + $0xc0] sm:$0xff] %v1264_v55  ;;  %v711_v62 = vadd.f32 %v710_v58, %v1858_v12  ;;  %v875_v63 = vadd.f32 %v874_v59, %v1860_v13  ;;  %v1167_v1 = vmax.f32 %v1046_v60, %v1047_v61 }
 0x16b   :  { %v1048_v2 = vmax.f32 %v711_v62, 0.0  ;;  %v1049_v3 = vmax.f32 %v875_v63, 0.0 }
 0x16c   :  { %v385_v5 = vpop.f32.mrf.mxu0  ;;  %v549_v6 = vpop.f32.mrf.mxu1 }
 0x16d   :  { %v1216_v4 = vmax.f32 %v1048_v2, %v1049_v3  ;;  %1485 = vmatmul.msk.f32.gmra.mxu2 %vm129_vm1, %v56_v0  ;;  %1535 = vmatmul.msk.f32.gmra.mxu3 %vm129_vm1, %v56_v0  ;;  %v386_v8 = vadd.f32 %v385_v5, %v1852_v10  ;;  %v550_v9 = vadd.f32 %v549_v6, %v1854_v11 }
 0x16f   :  { %v1265_v7 = vmax.f32 %v1167_v1, %v1216_v4  ;;  %v1050_v16 = vmax.f32 %v386_v8, 0.0  ;;  %v1051_v17 = vmax.f32 %v550_v9, 0.0  ;;  %1385 = vmatmul.msk.f32.gmra.mxu0 %vm129_vm1, %v56_v0  ;;  %1435 = vmatmul.msk.f32.gmra.mxu1 %vm129_vm1, %v56_v0  ;;  %v60_v4 = vld [vmem:[%s2432_s0 + $0x170] sm:$0xff] }
 0x170   :  { %v713_v14 = vpop.f32.mrf.mxu2  ;;  %v877_v15 = vpop.f32.mrf.mxu3 }
 0x171   :  { %1314 = vst [vmem:[%s2434_s3 + $0xc8] sm:$0xff] %v1265_v7  ;;  %v714_v18 = vadd.f32 %v713_v14, %v1858_v12  ;;  %v878_v19 = vadd.f32 %v877_v15, %v1860_v13  ;;  %v1168_v21 = vmax.f32 %v1050_v16, %v1051_v17 }
 0x173   :  { %v1052_v22 = vmax.f32 %v714_v18, 0.0  ;;  %v1053_v23 = vmax.f32 %v878_v19, 0.0 }
 0x174   :  { %v388_v25 = vpop.f32.mrf.mxu0  ;;  %v552_v26 = vpop.f32.mrf.mxu1 }
 0x175   :  { %v1217_v24 = vmax.f32 %v1052_v22, %v1053_v23  ;;  %1486 = vmatmul.msk.f32.gmra.mxu2 %vm129_vm1, %v57_v20  ;;  %1536 = vmatmul.msk.f32.gmra.mxu3 %vm129_vm1, %v57_v20  ;;  %v389_v28 = vadd.f32 %v388_v25, %v1852_v10  ;;  %v553_v29 = vadd.f32 %v552_v26, %v1854_v11 }
 0x177   :  { %v1266_v27 = vmax.f32 %v1168_v21, %v1217_v24  ;;  %v1054_v32 = vmax.f32 %v389_v28, 0.0  ;;  %v1055_v33 = vmax.f32 %v553_v29, 0.0  ;;  %1386 = vmatmul.msk.f32.gmra.mxu0 %vm129_vm1, %v57_v20  ;;  %1436 = vmatmul.msk.f32.gmra.mxu1 %vm129_vm1, %v57_v20  ;;  %v61_v24 = vld [vmem:[%s2432_s0 + $0x178] sm:$0xff] }
 0x178   :  { %v716_v30 = vpop.f32.mrf.mxu2  ;;  %v880_v31 = vpop.f32.mrf.mxu3 }
 0x179   :  { %1315 = vst [vmem:[%s2434_s3 + $0xd0] sm:$0xff] %v1266_v27  ;;  %v717_v34 = vadd.f32 %v716_v30, %v1858_v12  ;;  %v881_v35 = vadd.f32 %v880_v31, %v1860_v13  ;;  %v1169_v37 = vmax.f32 %v1054_v32, %v1055_v33 }
 0x17b   :  { %v1056_v38 = vmax.f32 %v717_v34, 0.0  ;;  %v1057_v39 = vmax.f32 %v881_v35, 0.0 }
 0x17c   :  { %v391_v41 = vpop.f32.mrf.mxu0  ;;  %v555_v42 = vpop.f32.mrf.mxu1 }
 0x17d   :  { %v1218_v40 = vmax.f32 %v1056_v38, %v1057_v39  ;;  %1487 = vmatmul.msk.f32.gmra.mxu2 %vm129_vm1, %v58_v36  ;;  %1537 = vmatmul.msk.f32.gmra.mxu3 %vm129_vm1, %v58_v36  ;;  %v392_v44 = vadd.f32 %v391_v41, %v1852_v10  ;;  %v556_v45 = vadd.f32 %v555_v42, %v1854_v11 }
 0x17f   :  { %v1267_v43 = vmax.f32 %v1169_v37, %v1218_v40  ;;  %v1058_v48 = vmax.f32 %v392_v44, 0.0  ;;  %v1059_v49 = vmax.f32 %v556_v45, 0.0  ;;  %1387 = vmatmul.msk.f32.gmra.mxu0 %vm129_vm1, %v58_v36  ;;  %1437 = vmatmul.msk.f32.gmra.mxu1 %vm129_vm1, %v58_v36  ;;  %v62_v40 = vld [vmem:[%s2432_s0 + $0x180] sm:$0xff] }
 0x180   :  { %v719_v46 = vpop.f32.mrf.mxu2  ;;  %v883_v47 = vpop.f32.mrf.mxu3 }
 0x181   :  { %1316 = vst [vmem:[%s2434_s3 + $0xd8] sm:$0xff] %v1267_v43  ;;  %v720_v50 = vadd.f32 %v719_v46, %v1858_v12  ;;  %v884_v51 = vadd.f32 %v883_v47, %v1860_v13  ;;  %v1170_v53 = vmax.f32 %v1058_v48, %v1059_v49 }
 0x183   :  { %v1060_v54 = vmax.f32 %v720_v50, 0.0  ;;  %v1061_v55 = vmax.f32 %v884_v51, 0.0 }
 0x184   :  { %v394_v57 = vpop.f32.mrf.mxu0  ;;  %v558_v58 = vpop.f32.mrf.mxu1 }
 0x185   :  { %v1219_v56 = vmax.f32 %v1060_v54, %v1061_v55  ;;  %1488 = vmatmul.msk.f32.gmra.mxu2 %vm129_vm1, %v59_v52  ;;  %1538 = vmatmul.msk.f32.gmra.mxu3 %vm129_vm1, %v59_v52  ;;  %v395_v60 = vadd.f32 %v394_v57, %v1852_v10  ;;  %v559_v61 = vadd.f32 %v558_v58, %v1854_v11 }
 0x187   :  { %v1268_v59 = vmax.f32 %v1170_v53, %v1219_v56  ;;  %v1062_v0 = vmax.f32 %v395_v60, 0.0  ;;  %v1063_v1 = vmax.f32 %v559_v61, 0.0  ;;  %1388 = vmatmul.msk.f32.gmra.mxu0 %vm129_vm1, %v59_v52  ;;  %1438 = vmatmul.msk.f32.gmra.mxu1 %vm129_vm1, %v59_v52 }
 0x188   :  { %v722_v62 = vpop.f32.mrf.mxu2  ;;  %v886_v63 = vpop.f32.mrf.mxu3 }
 0x189   :  { %1317 = vst [vmem:[%s2434_s3 + $0xe0] sm:$0xff] %v1268_v59  ;;  %v723_v2 = vadd.f32 %v722_v62, %v1858_v12  ;;  %v887_v3 = vadd.f32 %v886_v63, %v1860_v13  ;;  %v1171_v5 = vmax.f32 %v1062_v0, %v1063_v1 }
 0x18b   :  { %v1064_v6 = vmax.f32 %v723_v2, 0.0  ;;  %v1065_v7 = vmax.f32 %v887_v3, 0.0 }
 0x18c   :  { %v397_v9 = vpop.f32.mrf.mxu0  ;;  %v561_v14 = vpop.f32.mrf.mxu1 }
 0x18d   :  { %v1220_v8 = vmax.f32 %v1064_v6, %v1065_v7  ;;  %1489 = vmatmul.msk.f32.gmra.mxu2 %vm129_vm1, %v60_v4  ;;  %1539 = vmatmul.msk.f32.gmra.mxu3 %vm129_vm1, %v60_v4  ;;  %v398_v16 = vadd.f32 %v397_v9, %v1852_v10  ;;  %v562_v17 = vadd.f32 %v561_v14, %v1854_v11 }
 0x18f   :  { %v1269_v15 = vmax.f32 %v1171_v5, %v1220_v8  ;;  %v1066_v20 = vmax.f32 %v398_v16, 0.0  ;;  %v1067_v21 = vmax.f32 %v562_v17, 0.0  ;;  %1389 = vmatmul.msk.f32.gmra.mxu0 %vm129_vm1, %v60_v4  ;;  %1439 = vmatmul.msk.f32.gmra.mxu1 %vm129_vm1, %v60_v4 }
 0x190   :  { %v725_v18 = vpop.f32.mrf.mxu2  ;;  %v889_v19 = vpop.f32.mrf.mxu3 }
 0x191   :  { %1318 = vst [vmem:[%s2434_s3 + $0xe8] sm:$0xff] %v1269_v15  ;;  %v726_v22 = vadd.f32 %v725_v18, %v1858_v12  ;;  %v890_v23 = vadd.f32 %v889_v19, %v1860_v13  ;;  %v1172_v25 = vmax.f32 %v1066_v20, %v1067_v21 }
 0x193   :  { %v1068_v26 = vmax.f32 %v726_v22, 0.0  ;;  %v1069_v27 = vmax.f32 %v890_v23, 0.0 }
 0x194   :  { %v400_v29 = vpop.f32.mrf.mxu0  ;;  %v564_v30 = vpop.f32.mrf.mxu1 }
 0x195   :  { %v1221_v28 = vmax.f32 %v1068_v26, %v1069_v27  ;;  %1490 = vmatmul.msk.f32.gmra.mxu2 %vm129_vm1, %v61_v24  ;;  %1540 = vmatmul.msk.f32.gmra.mxu3 %vm129_vm1, %v61_v24  ;;  %v401_v32 = vadd.f32 %v400_v29, %v1852_v10  ;;  %v565_v33 = vadd.f32 %v564_v30, %v1854_v11 }
 0x197   :  { %v1270_v31 = vmax.f32 %v1172_v25, %v1221_v28  ;;  %v1070_v36 = vmax.f32 %v401_v32, 0.0  ;;  %v1071_v37 = vmax.f32 %v565_v33, 0.0  ;;  %1390 = vmatmul.msk.f32.gmra.mxu0 %vm129_vm1, %v61_v24  ;;  %1440 = vmatmul.msk.f32.gmra.mxu1 %vm129_vm1, %v61_v24 }
 0x198   :  { %v728_v34 = vpop.f32.mrf.mxu2  ;;  %v892_v35 = vpop.f32.mrf.mxu3 }
 0x199   :  { %1319 = vst [vmem:[%s2434_s3 + $0xf0] sm:$0xff] %v1270_v31  ;;  %v729_v38 = vadd.f32 %v728_v34, %v1858_v12  ;;  %v893_v39 = vadd.f32 %v892_v35, %v1860_v13  ;;  %v1173_v41 = vmax.f32 %v1070_v36, %v1071_v37 }
 0x19b   :  { %v1072_v42 = vmax.f32 %v729_v38, 0.0  ;;  %v1073_v43 = vmax.f32 %v893_v39, 0.0 }
 0x19c   :  { %v403_v45 = vpop.f32.mrf.mxu0  ;;  %v567_v46 = vpop.f32.mrf.mxu1 }
 0x19d   :  { %v1222_v44 = vmax.f32 %v1072_v42, %v1073_v43  ;;  %1491 = vmatmul.msk.f32.gmra.mxu2 %vm129_vm1, %v62_v40  ;;  %1541 = vmatmul.msk.f32.gmra.mxu3 %vm129_vm1, %v62_v40  ;;  %v404_v48 = vadd.f32 %v403_v45, %v1852_v10  ;;  %v568_v49 = vadd.f32 %v567_v46, %v1854_v11 }
 0x19f   :  { %v1271_v47 = vmax.f32 %v1173_v41, %v1222_v44  ;;  %v1074_v52 = vmax.f32 %v404_v48, 0.0  ;;  %v1075_v53 = vmax.f32 %v568_v49, 0.0  ;;  %1391 = vmatmul.msk.f32.gmra.mxu0 %vm129_vm1, %v62_v40  ;;  %1441 = vmatmul.msk.f32.gmra.mxu1 %vm129_vm1, %v62_v40 }
 0x1a0   :  { %v731_v50 = vpop.f32.mrf.mxu2  ;;  %v895_v51 = vpop.f32.mrf.mxu3 }
 0x1a1   :  { %1320 = vst [vmem:[%s2434_s3 + $0xf8] sm:$0xff] %v1271_v47  ;;  %v732_v54 = vadd.f32 %v731_v50, %v1858_v12  ;;  %v896_v55 = vadd.f32 %v895_v51, %v1860_v13  ;;  %v1174_v56 = vmax.f32 %v1074_v52, %v1075_v53 }
 0x1a3   :  { %v1076_v57 = vmax.f32 %v732_v54, 0.0  ;;  %v1077_v58 = vmax.f32 %v896_v55, 0.0 }
 0x1a4   :  { %v406_v60 = vpop.f32.mrf.mxu0  ;;  %v570_v61 = vpop.f32.mrf.mxu1 }
 0x1a5   :  { %v1223_v59 = vmax.f32 %v1076_v57, %v1077_v58  ;;  %v407_v63 = vadd.f32 %v406_v60, %v1852_v10  ;;  %v571_v0 = vadd.f32 %v570_v61, %v1854_v11 }
 0x1a7   :  { %v1272_v62 = vmax.f32 %v1174_v56, %v1223_v59  ;;  %v1078_v3 = vmax.f32 %v407_v63, 0.0  ;;  %v1079_v4 = vmax.f32 %v571_v0, 0.0 }
 0x1a8   :  { %v734_v1 = vpop.f32.mrf.mxu2  ;;  %v898_v2 = vpop.f32.mrf.mxu3 }
 0x1a9   :  { %1321 = vst [vmem:[%s2434_s3 + $0x100] sm:$0xff] %v1272_v62  ;;  %v735_v5 = vadd.f32 %v734_v1, %v1858_v12  ;;  %v899_v6 = vadd.f32 %v898_v2, %v1860_v13  ;;  %v1175_v7 = vmax.f32 %v1078_v3, %v1079_v4 }
 0x1ab   :  { %v1080_v8 = vmax.f32 %v735_v5, 0.0  ;;  %v1081_v9 = vmax.f32 %v899_v6, 0.0 }
 0x1ac   :  { %v409_v15 = vpop.f32.mrf.mxu0  ;;  %v573_v16 = vpop.f32.mrf.mxu1 }
 0x1ad   :  { %v1224_v14 = vmax.f32 %v1080_v8, %v1081_v9  ;;  %v410_v18 = vadd.f32 %v409_v15, %v1852_v10  ;;  %v574_v19 = vadd.f32 %v573_v16, %v1854_v11 }
 0x1af   :  { %v1273_v17 = vmax.f32 %v1175_v7, %v1224_v14  ;;  %v1082_v22 = vmax.f32 %v410_v18, 0.0  ;;  %v1083_v23 = vmax.f32 %v574_v19, 0.0 }
 0x1b0   :  { %v737_v20 = vpop.f32.mrf.mxu2  ;;  %v901_v21 = vpop.f32.mrf.mxu3 }
 0x1b1   :  { %1322 = vst [vmem:[%s2434_s3 + $0x108] sm:$0xff] %v1273_v17  ;;  %v738_v24 = vadd.f32 %v737_v20, %v1858_v12  ;;  %v902_v25 = vadd.f32 %v901_v21, %v1860_v13  ;;  %v1176_v26 = vmax.f32 %v1082_v22, %v1083_v23 }
 0x1b3   :  { %v1084_v27 = vmax.f32 %v738_v24, 0.0  ;;  %v1085_v28 = vmax.f32 %v902_v25, 0.0 }
 0x1b4   :  { %v412_v30 = vpop.f32.mrf.mxu0  ;;  %v576_v31 = vpop.f32.mrf.mxu1 }
 0x1b5   :  { %v1225_v29 = vmax.f32 %v1084_v27, %v1085_v28  ;;  %v413_v33 = vadd.f32 %v412_v30, %v1852_v10  ;;  %v577_v34 = vadd.f32 %v576_v31, %v1854_v11 }
 0x1b7   :  { %v1274_v32 = vmax.f32 %v1176_v26, %v1225_v29  ;;  %v1086_v37 = vmax.f32 %v413_v33, 0.0  ;;  %v1087_v38 = vmax.f32 %v577_v34, 0.0 }
 0x1b8   :  { %v740_v35 = vpop.f32.mrf.mxu2  ;;  %v904_v36 = vpop.f32.mrf.mxu3 }
 0x1b9   :  { %1323 = vst [vmem:[%s2434_s3 + $0x110] sm:$0xff] %v1274_v32  ;;  %v741_v39 = vadd.f32 %v740_v35, %v1858_v12  ;;  %v905_v40 = vadd.f32 %v904_v36, %v1860_v13  ;;  %v1177_v41 = vmax.f32 %v1086_v37, %v1087_v38 }
 0x1bb   :  { %v1088_v42 = vmax.f32 %v741_v39, 0.0  ;;  %v1089_v43 = vmax.f32 %v905_v40, 0.0 }
 0x1bc   :  { %v415_v45 = vpop.f32.mrf.mxu0  ;;  %v579_v46 = vpop.f32.mrf.mxu1 }
 0x1bd   :  { %v1226_v44 = vmax.f32 %v1088_v42, %v1089_v43  ;;  %v416_v48 = vadd.f32 %v415_v45, %v1852_v10  ;;  %v580_v49 = vadd.f32 %v579_v46, %v1854_v11 }
 0x1bf   :  { %v1275_v47 = vmax.f32 %v1177_v41, %v1226_v44  ;;  %v1090_v52 = vmax.f32 %v416_v48, 0.0  ;;  %v1091_v53 = vmax.f32 %v580_v49, 0.0 }
 0x1c0   :  { %v743_v50 = vpop.f32.mrf.mxu2  ;;  %v907_v51 = vpop.f32.mrf.mxu3 }
 0x1c1   :  { %1324 = vst [vmem:[%s2434_s3 + $0x118] sm:$0xff] %v1275_v47  ;;  %v744_v54 = vadd.f32 %v743_v50, %v1858_v12  ;;  %v908_v55 = vadd.f32 %v907_v51, %v1860_v13  ;;  %v1178_v56 = vmax.f32 %v1090_v52, %v1091_v53 }
 0x1c3   :  { %v1092_v57 = vmax.f32 %v744_v54, 0.0  ;;  %v1093_v58 = vmax.f32 %v908_v55, 0.0 }
 0x1c4   :  { %v418_v60 = vpop.f32.mrf.mxu0  ;;  %v582_v61 = vpop.f32.mrf.mxu1 }
 0x1c5   :  { %v1227_v59 = vmax.f32 %v1092_v57, %v1093_v58  ;;  %v419_v63 = vadd.f32 %v418_v60, %v1852_v10  ;;  %v583_v0 = vadd.f32 %v582_v61, %v1854_v11 }
 0x1c7   :  { %v1276_v62 = vmax.f32 %v1178_v56, %v1227_v59  ;;  %v1094_v3 = vmax.f32 %v419_v63, 0.0  ;;  %v1095_v4 = vmax.f32 %v583_v0, 0.0 }
 0x1c8   :  { %v746_v1 = vpop.f32.mrf.mxu2  ;;  %v910_v2 = vpop.f32.mrf.mxu3 }
 0x1c9   :  { %1325 = vst [vmem:[%s2434_s3 + $0x120] sm:$0xff] %v1276_v62  ;;  %v747_v5 = vadd.f32 %v746_v1, %v1858_v12  ;;  %v911_v6 = vadd.f32 %v910_v2, %v1860_v13  ;;  %v1179_v7 = vmax.f32 %v1094_v3, %v1095_v4 }
 0x1cb   :  { %v1096_v8 = vmax.f32 %v747_v5, 0.0  ;;  %v1097_v9 = vmax.f32 %v911_v6, 0.0 }
 0x1cc   :  { %v421_v15 = vpop.f32.mrf.mxu0  ;;  %v585_v16 = vpop.f32.mrf.mxu1 }
 0x1cd   :  { %v1228_v14 = vmax.f32 %v1096_v8, %v1097_v9  ;;  %v422_v18 = vadd.f32 %v421_v15, %v1852_v10  ;;  %v586_v19 = vadd.f32 %v585_v16, %v1854_v11 }
 0x1cf   :  { %v1277_v17 = vmax.f32 %v1179_v7, %v1228_v14  ;;  %v1098_v22 = vmax.f32 %v422_v18, 0.0  ;;  %v1099_v23 = vmax.f32 %v586_v19, 0.0 }
 0x1d0   :  { %v749_v20 = vpop.f32.mrf.mxu2  ;;  %v913_v21 = vpop.f32.mrf.mxu3 }
 0x1d1   :  { %1326 = vst [vmem:[%s2434_s3 + $0x128] sm:$0xff] %v1277_v17  ;;  %v750_v24 = vadd.f32 %v749_v20, %v1858_v12  ;;  %v914_v25 = vadd.f32 %v913_v21, %v1860_v13  ;;  %v1180_v26 = vmax.f32 %v1098_v22, %v1099_v23 }
 0x1d3   :  { %v1100_v27 = vmax.f32 %v750_v24, 0.0  ;;  %v1101_v28 = vmax.f32 %v914_v25, 0.0 }
 0x1d4   :  { %v424_v30 = vpop.f32.mrf.mxu0  ;;  %v588_v31 = vpop.f32.mrf.mxu1 }
 0x1d5   :  { %v1229_v29 = vmax.f32 %v1100_v27, %v1101_v28  ;;  %v425_v33 = vadd.f32 %v424_v30, %v1852_v10  ;;  %v589_v34 = vadd.f32 %v588_v31, %v1854_v11 }
 0x1d7   :  { %v1278_v32 = vmax.f32 %v1180_v26, %v1229_v29  ;;  %v1102_v37 = vmax.f32 %v425_v33, 0.0  ;;  %v1103_v38 = vmax.f32 %v589_v34, 0.0 }
 0x1d8   :  { %v752_v35 = vpop.f32.mrf.mxu2  ;;  %v916_v36 = vpop.f32.mrf.mxu3 }
 0x1d9   :  { %1327 = vst [vmem:[%s2434_s3 + $0x130] sm:$0xff] %v1278_v32  ;;  %v753_v39 = vadd.f32 %v752_v35, %v1858_v12  ;;  %v917_v40 = vadd.f32 %v916_v36, %v1860_v13  ;;  %v1181_v41 = vmax.f32 %v1102_v37, %v1103_v38 }
 0x1db   :  { %v1104_v42 = vmax.f32 %v753_v39, 0.0  ;;  %v1105_v43 = vmax.f32 %v917_v40, 0.0 }
 0x1dc   :  { %v427_v45 = vpop.f32.mrf.mxu0  ;;  %v591_v46 = vpop.f32.mrf.mxu1 }
 0x1dd   :  { %v1230_v44 = vmax.f32 %v1104_v42, %v1105_v43  ;;  %v428_v48 = vadd.f32 %v427_v45, %v1852_v10  ;;  %v592_v49 = vadd.f32 %v591_v46, %v1854_v11 }
 0x1df   :  { %v1279_v47 = vmax.f32 %v1181_v41, %v1230_v44  ;;  %v1106_v52 = vmax.f32 %v428_v48, 0.0  ;;  %v1107_v53 = vmax.f32 %v592_v49, 0.0 }
 0x1e0   :  { %v755_v50 = vpop.f32.mrf.mxu2  ;;  %v919_v51 = vpop.f32.mrf.mxu3 }
 0x1e1   :  { %1328 = vst [vmem:[%s2434_s3 + $0x138] sm:$0xff] %v1279_v47  ;;  %v756_v54 = vadd.f32 %v755_v50, %v1858_v12  ;;  %v920_v55 = vadd.f32 %v919_v51, %v1860_v13  ;;  %v1182_v56 = vmax.f32 %v1106_v52, %v1107_v53 }
 0x1e3   :  { %v1108_v57 = vmax.f32 %v756_v54, 0.0  ;;  %v1109_v58 = vmax.f32 %v920_v55, 0.0 }
 0x1e4   :  { %v430_v60 = vpop.f32.mrf.mxu0  ;;  %v594_v61 = vpop.f32.mrf.mxu1 }
 0x1e5   :  { %v1231_v59 = vmax.f32 %v1108_v57, %v1109_v58  ;;  %v431_v63 = vadd.f32 %v430_v60, %v1852_v10  ;;  %v595_v0 = vadd.f32 %v594_v61, %v1854_v11 }
 0x1e7   :  { %v1280_v62 = vmax.f32 %v1182_v56, %v1231_v59  ;;  %v1110_v3 = vmax.f32 %v431_v63, 0.0  ;;  %v1111_v4 = vmax.f32 %v595_v0, 0.0 }
 0x1e8   :  { %v758_v1 = vpop.f32.mrf.mxu2  ;;  %v922_v2 = vpop.f32.mrf.mxu3 }
 0x1e9   :  { %1329 = vst [vmem:[%s2434_s3 + $0x140] sm:$0xff] %v1280_v62  ;;  %v759_v5 = vadd.f32 %v758_v1, %v1858_v12  ;;  %v923_v6 = vadd.f32 %v922_v2, %v1860_v13  ;;  %v1183_v7 = vmax.f32 %v1110_v3, %v1111_v4 }
 0x1eb   :  { %v1112_v8 = vmax.f32 %v759_v5, 0.0  ;;  %v1113_v9 = vmax.f32 %v923_v6, 0.0 }
 0x1ec   :  { %v433_v15 = vpop.f32.mrf.mxu0  ;;  %v597_v16 = vpop.f32.mrf.mxu1 }
 0x1ed   :  { %v1232_v14 = vmax.f32 %v1112_v8, %v1113_v9  ;;  %v434_v18 = vadd.f32 %v433_v15, %v1852_v10  ;;  %v598_v19 = vadd.f32 %v597_v16, %v1854_v11 }
 0x1ef   :  { %v1281_v17 = vmax.f32 %v1183_v7, %v1232_v14  ;;  %v1114_v22 = vmax.f32 %v434_v18, 0.0  ;;  %v1115_v23 = vmax.f32 %v598_v19, 0.0 }
 0x1f0   :  { %v761_v20 = vpop.f32.mrf.mxu2  ;;  %v925_v21 = vpop.f32.mrf.mxu3 }
 0x1f1   :  { %1330 = vst [vmem:[%s2434_s3 + $0x148] sm:$0xff] %v1281_v17  ;;  %v762_v24 = vadd.f32 %v761_v20, %v1858_v12  ;;  %v926_v25 = vadd.f32 %v925_v21, %v1860_v13  ;;  %v1184_v26 = vmax.f32 %v1114_v22, %v1115_v23 }
 0x1f3   :  { %v1116_v27 = vmax.f32 %v762_v24, 0.0  ;;  %v1117_v28 = vmax.f32 %v926_v25, 0.0 }
 0x1f4   :  { %v436_v30 = vpop.f32.mrf.mxu0  ;;  %v600_v31 = vpop.f32.mrf.mxu1 }
 0x1f5   :  { %v1233_v29 = vmax.f32 %v1116_v27, %v1117_v28  ;;  %v437_v33 = vadd.f32 %v436_v30, %v1852_v10  ;;  %v601_v34 = vadd.f32 %v600_v31, %v1854_v11 }
 0x1f7   :  { %v1282_v32 = vmax.f32 %v1184_v26, %v1233_v29  ;;  %v1118_v37 = vmax.f32 %v437_v33, 0.0  ;;  %v1119_v38 = vmax.f32 %v601_v34, 0.0 }
 0x1f8   :  { %v764_v35 = vpop.f32.mrf.mxu2  ;;  %v928_v36 = vpop.f32.mrf.mxu3 }
 0x1f9   :  { %1331 = vst [vmem:[%s2434_s3 + $0x150] sm:$0xff] %v1282_v32  ;;  %v765_v39 = vadd.f32 %v764_v35, %v1858_v12  ;;  %v929_v40 = vadd.f32 %v928_v36, %v1860_v13  ;;  %v1185_v41 = vmax.f32 %v1118_v37, %v1119_v38 }
 0x1fb   :  { %v1120_v42 = vmax.f32 %v765_v39, 0.0  ;;  %v1121_v43 = vmax.f32 %v929_v40, 0.0 }
 0x1fc   :  { %v439_v45 = vpop.f32.mrf.mxu0  ;;  %v603_v46 = vpop.f32.mrf.mxu1 }
 0x1fd   :  { %v1234_v44 = vmax.f32 %v1120_v42, %v1121_v43  ;;  %v440_v48 = vadd.f32 %v439_v45, %v1852_v10  ;;  %v604_v49 = vadd.f32 %v603_v46, %v1854_v11 }
 0x1ff   :  { %v1283_v47 = vmax.f32 %v1185_v41, %v1234_v44  ;;  %v1122_v52 = vmax.f32 %v440_v48, 0.0  ;;  %v1123_v53 = vmax.f32 %v604_v49, 0.0 }
 0x200   :  { %v767_v50 = vpop.f32.mrf.mxu2  ;;  %v931_v51 = vpop.f32.mrf.mxu3 }
 0x201   :  { %1332 = vst [vmem:[%s2434_s3 + $0x158] sm:$0xff] %v1283_v47  ;;  %v768_v54 = vadd.f32 %v767_v50, %v1858_v12  ;;  %v932_v55 = vadd.f32 %v931_v51, %v1860_v13  ;;  %v1186_v56 = vmax.f32 %v1122_v52, %v1123_v53 }
 0x203   :  { %v1124_v57 = vmax.f32 %v768_v54, 0.0  ;;  %v1125_v58 = vmax.f32 %v932_v55, 0.0 }
 0x204   :  { %v442_v60 = vpop.f32.mrf.mxu0  ;;  %v606_v61 = vpop.f32.mrf.mxu1 }
 0x205   :  { %v1235_v59 = vmax.f32 %v1124_v57, %v1125_v58  ;;  %v443_v63 = vadd.f32 %v442_v60, %v1852_v10  ;;  %v607_v0 = vadd.f32 %v606_v61, %v1854_v11 }
 0x207   :  { %v1284_v62 = vmax.f32 %v1186_v56, %v1235_v59  ;;  %v1126_v3 = vmax.f32 %v443_v63, 0.0  ;;  %v1127_v4 = vmax.f32 %v607_v0, 0.0 }
 0x208   :  { %v770_v1 = vpop.f32.mrf.mxu2  ;;  %v934_v2 = vpop.f32.mrf.mxu3 }
 0x209   :  { %1333 = vst [vmem:[%s2434_s3 + $0x160] sm:$0xff] %v1284_v62  ;;  %v771_v5 = vadd.f32 %v770_v1, %v1858_v12  ;;  %v935_v6 = vadd.f32 %v934_v2, %v1860_v13  ;;  %v1187_v7 = vmax.f32 %v1126_v3, %v1127_v4 }
 0x20b   :  { %v1128_v8 = vmax.f32 %v771_v5, 0.0  ;;  %v1129_v9 = vmax.f32 %v935_v6, 0.0 }
 0x20c   :  { %v445_v15 = vpop.f32.mrf.mxu0  ;;  %v609_v16 = vpop.f32.mrf.mxu1 }
 0x20d   :  { %v1236_v14 = vmax.f32 %v1128_v8, %v1129_v9  ;;  %v446_v18 = vadd.f32 %v445_v15, %v1852_v10  ;;  %v610_v19 = vadd.f32 %v609_v16, %v1854_v11 }
 0x20f   :  { %v1285_v17 = vmax.f32 %v1187_v7, %v1236_v14  ;;  %v1130_v22 = vmax.f32 %v446_v18, 0.0  ;;  %v1131_v23 = vmax.f32 %v610_v19, 0.0 }
 0x210   :  { %v773_v20 = vpop.f32.mrf.mxu2  ;;  %v937_v21 = vpop.f32.mrf.mxu3 }
 0x211   :  { %1334 = vst [vmem:[%s2434_s3 + $0x168] sm:$0xff] %v1285_v17  ;;  %v774_v24 = vadd.f32 %v773_v20, %v1858_v12  ;;  %v938_v25 = vadd.f32 %v937_v21, %v1860_v13  ;;  %v1188_v26 = vmax.f32 %v1130_v22, %v1131_v23 }
 0x213   :  { %v1132_v27 = vmax.f32 %v774_v24, 0.0  ;;  %v1133_v28 = vmax.f32 %v938_v25, 0.0 }
 0x214   :  { %v448_v30 = vpop.f32.mrf.mxu0  ;;  %v612_v31 = vpop.f32.mrf.mxu1 }
 0x215   :  { %v1237_v29 = vmax.f32 %v1132_v27, %v1133_v28  ;;  %v449_v33 = vadd.f32 %v448_v30, %v1852_v10  ;;  %v613_v34 = vadd.f32 %v612_v31, %v1854_v11 }
 0x217   :  { %v1286_v32 = vmax.f32 %v1188_v26, %v1237_v29  ;;  %v1134_v37 = vmax.f32 %v449_v33, 0.0  ;;  %v1135_v38 = vmax.f32 %v613_v34, 0.0 }
 0x218   :  { %v776_v35 = vpop.f32.mrf.mxu2  ;;  %v940_v36 = vpop.f32.mrf.mxu3 }
 0x219   :  { %1335 = vst [vmem:[%s2434_s3 + $0x170] sm:$0xff] %v1286_v32  ;;  %v777_v39 = vadd.f32 %v776_v35, %v1858_v12  ;;  %v941_v40 = vadd.f32 %v940_v36, %v1860_v13  ;;  %v1189_v41 = vmax.f32 %v1134_v37, %v1135_v38 }
 0x21b   :  { %v1136_v42 = vmax.f32 %v777_v39, 0.0  ;;  %v1137_v43 = vmax.f32 %v941_v40, 0.0 }
 0x21c   :  { %v451_v45 = vpop.f32.mrf.mxu0  ;;  %v615_v46 = vpop.f32.mrf.mxu1 }
 0x21d   :  { %v1238_v44 = vmax.f32 %v1136_v42, %v1137_v43  ;;  %v452_v48 = vadd.f32 %v451_v45, %v1852_v10  ;;  %v616_v49 = vadd.f32 %v615_v46, %v1854_v11 }
 0x21f   :  { %v1287_v47 = vmax.f32 %v1189_v41, %v1238_v44  ;;  %v1138_v52 = vmax.f32 %v452_v48, 0.0  ;;  %v1139_v53 = vmax.f32 %v616_v49, 0.0 }
 0x220   :  { %v779_v50 = vpop.f32.mrf.mxu2  ;;  %v943_v51 = vpop.f32.mrf.mxu3 }
 0x221   :  { %1336 = vst [vmem:[%s2434_s3 + $0x178] sm:$0xff] %v1287_v47  ;;  %v780_v54 = vadd.f32 %v779_v50, %v1858_v12  ;;  %v944_v55 = vadd.f32 %v943_v51, %v1860_v13  ;;  %v1190_v56 = vmax.f32 %v1138_v52, %v1139_v53 }
 0x223   :  { %v1140_v57 = vmax.f32 %v780_v54, 0.0  ;;  %v1141_v58 = vmax.f32 %v944_v55, 0.0 }
 0x225   :  { %v1239_v59 = vmax.f32 %v1140_v57, %v1141_v58 }
 0x227   :  { %v1288_v60 = vmax.f32 %v1190_v56, %v1239_v59 }
 0x229   :  { %1337 = vst [vmem:[%s2434_s3 + $0x180] sm:$0xff] %v1288_v60 }

// kernel: lenet_forward.5
= control target key start
LH: loop header
LB: loop body
LE: loop exit
PB: predicated region body
PF: predicated region fallthrough
CT: control target
= control target key end

     0   :  { %s607_s0 = inlined_call_operand.vmem [shape: f32[2,400], index: 0, kind: input, shape index: {}]   ;;  %s608_s1 = inlined_call_operand.vmem [shape: f32[400,128], index: 1, kind: input, shape index: {}]   ;;  %s609_s2 = inlined_call_operand.vmem [shape: f32[1,128], index: 2, kind: input, shape index: {}]   ;;  %s610_s3 = inlined_call_operand.vmem [shape: f32[128,128], index: 3, kind: input, shape index: {}]   ;;  %s611_s4 = inlined_call_operand.vmem [shape: f32[1,128], index: 4, kind: input, shape index: {}]   ;;  %s612_s5 = inlined_call_operand.vmem [shape: f32[128,128], index: 5, kind: input, shape index: {}]   ;;  %s613_s6 = inlined_call_operand.vmem [shape: f32[1,128], index: 6, kind: input, shape index: {}]   ;;  %s614_s7 = inlined_call_operand.hbm [shape: f32[2,128], index: 7, kind: output, shape index: {}]  }
   0x1   :  { %v75_v0 = vld [vmem:[%s608_s1 + $0x178] sm:$0xff]  ;;  %v74_v2 = vld [vmem:[%s608_s1 + $0x170] sm:$0xff]  ;;  %v73_v5 = vld [vmem:[%s608_s1 + $0x168] sm:$0xff] }
   0x2   :  { %v43_v1 = vld [vmem:[%s608_s1 + $0x78] sm:$0xff]  ;;  %134 = vmatpush.msra.mxu2 %v75_v0  ;;  %v42_v3 = vld [vmem:[%s608_s1 + $0x70] sm:$0xff]  ;;  %v41_v6 = vld [vmem:[%s608_s1 + $0x68] sm:$0xff] }
   0x3   :  { %94 = vmatpush.msra.mxu0 %v43_v1  ;;  %v59_v4 = vld [vmem:[%s608_s1 + $0xf8] sm:$0xff]  ;;  %v58_v7 = vld [vmem:[%s608_s1 + $0xf0] sm:$0xff]  ;;  %v57_v8 = vld [vmem:[%s608_s1 + $0xe8] sm:$0xff] }
   0x4   :  { %114 = vmatpush.msra.mxu1 %v59_v4  ;;  %135 = vmatpush.msra.mxu2 %v74_v2  ;;  %v72_v9 = vld [vmem:[%s608_s1 + $0x160] sm:$0xff]  ;;  %v71_v12 = vld [vmem:[%s608_s1 + $0x158] sm:$0xff]  ;;  %v70_v15 = vld [vmem:[%s608_s1 + $0x150] sm:$0xff] }
   0x5   :  { %95 = vmatpush.msra.mxu0 %v42_v3  ;;  %v40_v10 = vld [vmem:[%s608_s1 + $0x60] sm:$0xff]  ;;  %v39_v13 = vld [vmem:[%s608_s1 + $0x58] sm:$0xff]  ;;  %v38_v16 = vld [vmem:[%s608_s1 + $0x50] sm:$0xff] }
   0x6   :  { %115 = vmatpush.msra.mxu1 %v58_v7  ;;  %136 = vmatpush.msra.mxu2 %v73_v5  ;;  %v56_v11 = vld [vmem:[%s608_s1 + $0xe0] sm:$0xff]  ;;  %v55_v14 = vld [vmem:[%s608_s1 + $0xd8] sm:$0xff]  ;;  %v54_v17 = vld [vmem:[%s608_s1 + $0xd0] sm:$0xff] }
   0x7   :  { %96 = vmatpush.msra.mxu0 %v41_v6  ;;  %v69_v18 = vld [vmem:[%s608_s1 + $0x148] sm:$0xff]  ;;  %v68_v21 = vld [vmem:[%s608_s1 + $0x140] sm:$0xff]  ;;  %v67_v24 = vld [vmem:[%s608_s1 + $0x138] sm:$0xff] }
   0x8   :  { %116 = vmatpush.msra.mxu1 %v57_v8  ;;  %137 = vmatpush.msra.mxu2 %v72_v9  ;;  %v37_v19 = vld [vmem:[%s608_s1 + $0x48] sm:$0xff]  ;;  %v36_v22 = vld [vmem:[%s608_s1 + $0x40] sm:$0xff]  ;;  %v35_v25 = vld [vmem:[%s608_s1 + $0x38] sm:$0xff] }
   0x9   :  { %97 = vmatpush.msra.mxu0 %v40_v10  ;;  %v53_v20 = vld [vmem:[%s608_s1 + $0xc8] sm:$0xff]  ;;  %v52_v23 = vld [vmem:[%s608_s1 + $0xc0] sm:$0xff]  ;;  %v51_v26 = vld [vmem:[%s608_s1 + $0xb8] sm:$0xff] }
   0xa   :  { %117 = vmatpush.msra.mxu1 %v56_v11  ;;  %138 = vmatpush.msra.mxu2 %v71_v12  ;;  %v77_v27 = vld [vmem:[%s608_s1 + $0x188] sm:$0xff]  ;;  %v27_v28 = vld [vmem:[%s607_s0] sm:$0xff]  ;;  %v66_v29 = vld [vmem:[%s608_s1 + $0x130] sm:$0xff] }
   0xb   :  { %98 = vmatpush.msra.mxu0 %v39_v13  ;;  %v34_v30 = vld [vmem:[%s608_s1 + $0x30] sm:$0xff]  ;;  %168 = vmatpush.msra.mxu3 %v77_v27  ;;  %83 = vst [vmem:[#allocation1] ss:$4 sm:$0xff] %v27_v28  ;;  %v76_v31 = vld [vmem:[%s608_s1 + $0x180] sm:$0xff]  ;;  %v190_v33 = vld [vmem:[%s610_s3 + $0x78] sm:$0xff] }
   0xc   :  { %118 = vmatpush.msra.mxu1 %v55_v14  ;;  %139 = vmatpush.msra.mxu2 %v70_v15  ;;  %v50_v32 = vld [vmem:[%s608_s1 + $0xb0] sm:$0xff]  ;;  %v65_v34 = vld [vmem:[%s608_s1 + $0x128] sm:$0xff]  ;;  %v64_v36 = vld [vmem:[%s608_s1 + $0x120] sm:$0xff] }
   0xd   :  { %99 = vmatpush.msra.mxu0 %v38_v16  ;;  %v33_v35 = vld [vmem:[%s608_s1 + $0x28] sm:$0xff]  ;;  %169 = vmatpush.msra.mxu3 %v76_v31  ;;  %v32_v37 = vld [vmem:[%s608_s1 + $0x20] sm:$0xff]  ;;  %v189_v39 = vld [vmem:[%s610_s3 + $0x70] sm:$0xff] }
   0xe   :  { %119 = vmatpush.msra.mxu1 %v54_v17  ;;  %140 = vmatpush.msra.mxu2 %v69_v18  ;;  %v49_v38 = vld [vmem:[%s608_s1 + $0xa8] sm:$0xff]  ;;  %v48_v40 = vld [vmem:[%s608_s1 + $0xa0] sm:$0xff] }
   0xf   :  { %100 = vmatpush.msra.mxu0 %v37_v19  ;;  %195 = vmatpush.msrb.mxu3 %v190_v33  ;;  %v188_v41 = vld [vmem:[%s610_s3 + $0x68] sm:$0xff] }
  0x10   :  { %120 = vmatpush.msra.mxu1 %v53_v20  ;;  %141 = vmatpush.msra.mxu2 %v68_v21 }
  0x11   :  { %101 = vmatpush.msra.mxu0 %v36_v22 }
  0x12   :  { %121 = vmatpush.msra.mxu1 %v52_v23  ;;  %142 = vmatpush.msra.mxu2 %v67_v24 }
  0x13   :  { %102 = vmatpush.msra.mxu0 %v35_v25 }
  0x14   :  { %122 = vmatpush.msra.mxu1 %v51_v26  ;;  %143 = vmatpush.msra.mxu2 %v66_v29 }
  0x15   :  { %103 = vmatpush.msra.mxu0 %v34_v30 }
  0x16   :  { %123 = vmatpush.msra.mxu1 %v50_v32  ;;  %144 = vmatpush.msra.mxu2 %v65_v34 }
  0x17   :  { %104 = vmatpush.msra.mxu0 %v33_v35 }
  0x18   :  { %12 = vsyncpa [#allocation3], 0  ;;  %124 = vmatpush.msra.mxu1 %v49_v38  ;;  %v63_v42 = vld [vmem:[%s608_s1 + $0x118] sm:$0xff]  ;;  %196 = vmatpush.msrb.mxu3 %v189_v39  ;;  %vm91_vm0 = vcmask 130048   ;;  %v62_v45 = vld [vmem:[%s608_s1 + $0x110] sm:$0xff]  ;;  %s305_s24 = smov [#allocation2]  }
  0x19   :  { %v31_v43 = vld [vmem:[%s608_s1 + $0x18] sm:$0xff]  ;;  %145 = vmatpush.msra.mxu2 %v64_v36  ;;  %105 = vmatpush.msra.mxu0 %v32_v37  ;;  %v30_v46 = vld [vmem:[%s608_s1 + $0x10] sm:$0xff]  ;;  %v187_v49 = vld [vmem:[%s610_s3 + $0x60] sm:$0xff]  ;;  %s263_s25 = sshll.u32 %s305_s24, 4  ;;  %s264_s25 = int_to_ptr.vmem [resolvable:$true] %s263_s25 }
  0x1a   :  { %v47_v44 = vld [vmem:[%s608_s1 + $0x98] sm:$0xff]  ;;  %125 = vmatpush.msra.mxu1 %v48_v40  ;;  %197 = vmatpush.msrb.mxu3 %v188_v41  ;;  %v46_v48 = vld [vmem:[%s608_s1 + $0x90] sm:$0xff]  ;;  %v61_v50 = vld [vmem:[%s608_s1 + $0x108] sm:$0xff] }
  0x1b   :  { %v87_v47 = vld.sshfl [vmem:[#allocation1 + $0x18] sm:$0xff pattern:$0x73625140]  ;;  %146 = vmatpush.msra.mxu2 %v63_v42  ;;  %106 = vmatpush.msra.mxu0 %v31_v43  ;;  %v29_v51 = vld [vmem:[%s608_s1 + $0x8] sm:$0xff]  ;;  %v60_v54 = vld [vmem:[%s608_s1 + $0x100] sm:$0xff] }
  0x1c   :  { %126 = vmatpush.msra.mxu1 %v47_v44  ;;  %274 = vmatmul.msk.f32.vlgmr.msra.gmra.mxu3 %vm91_vm0, %v87_v47  ;;  %v45_v52 = vld [vmem:[%s608_s1 + $0x88] sm:$0xff]  ;;  %v186_v53 = vld [vmem:[%s610_s3 + $0x58] sm:$0xff]  ;;  %v28_v55 = vld [vmem:[%s608_s1] sm:$0xff] }
  0x1d   :  { %147 = vmatpush.msra.mxu2 %v62_v45  ;;  %107 = vmatpush.msra.mxu0 %v30_v46  ;;  %v86_v56 = vld.sshfl [vmem:[#allocation1 + $0x10] sm:$0xff pattern:$0x73625140]  ;;  %v84_v57 = vld.sshfl [vmem:[#allocation1] sm:$0xff pattern:$0x73625140] }
  0x1e   :  { %127 = vmatpush.msra.mxu1 %v46_v48  ;;  %198 = vmatpush.msrb.mxu3 %v187_v49  ;;  %v44_v58 = vld [vmem:[%s608_s1 + $0x80] sm:$0xff]  ;;  %v185_v59 = vld [vmem:[%s610_s3 + $0x50] sm:$0xff]  ;;  %v85_v60 = vld.sshfl [vmem:[#allocation1 + $0x8] sm:$0xff pattern:$0x73625140] }
  0x1f   :  { %148 = vmatpush.msra.mxu2 %v61_v50  ;;  %108 = vmatpush.msra.mxu0 %v29_v51  ;;  %v184_v61 = vld [vmem:[%s610_s3 + $0x48] sm:$0xff]  ;;  %v183_v62 = vld [vmem:[%s610_s3 + $0x40] sm:$0xff]  ;;  %v182_v63 = vld [vmem:[%s610_s3 + $0x38] sm:$0xff] }
  0x20   :  { %128 = vmatpush.msra.mxu1 %v45_v52  ;;  %199 = vmatpush.msrb.mxu3 %v186_v53  ;;  %v181_v0 = vld [vmem:[%s610_s3 + $0x30] sm:$0xff]  ;;  %v180_v1 = vld [vmem:[%s610_s3 + $0x28] sm:$0xff]  ;;  %v179_v2 = vld [vmem:[%s610_s3 + $0x20] sm:$0xff] }
  0x21   :  { %149 = vmatpush.msra.mxu2 %v60_v54  ;;  %109 = vmatpush.msra.mxu0 %v28_v55  ;;  %v178_v3 = vld [vmem:[%s610_s3 + $0x18] sm:$0xff]  ;;  %v177_v4 = vld [vmem:[%s610_s3 + $0x10] sm:$0xff]  ;;  %v176_v5 = vld [vmem:[%s610_s3 + $0x8] sm:$0xff] }
  0x22   :  { %150 = vmatmul.f32.vlgmr.msra.gmra.mxu2 %v86_v56  ;;  %110 = vmatmul.f32.vlgmr.msra.gmra.mxu0 %v84_v57  ;;  %v175_v6 = vld [vmem:[%s610_s3] sm:$0xff]  ;;  %v231_v7 = vld [vmem:[%s612_s5 + $0x78] sm:$0xff]  ;;  %v230_v8 = vld [vmem:[%s612_s5 + $0x70] sm:$0xff] }
  0x23   :  { %129 = vmatpush.msra.mxu1 %v44_v58  ;;  %200 = vmatpush.msrb.mxu3 %v185_v59  ;;  %v229_v9 = vld [vmem:[%s612_s5 + $0x68] sm:$0xff]  ;;  %v228_v10 = vld [vmem:[%s612_s5 + $0x60] sm:$0xff]  ;;  %v227_v11 = vld [vmem:[%s612_s5 + $0x58] sm:$0xff] }
  0x24   :  { %130 = vmatmul.f32.vlgmr.msra.gmra.mxu1 %v85_v60  ;;  %236 = vmatpush.msrb.mxu0 %v231_v7  ;;  %v226_v12 = vld [vmem:[%s612_s5 + $0x50] sm:$0xff]  ;;  %v225_v13 = vld [vmem:[%s612_s5 + $0x48] sm:$0xff]  ;;  %v224_v14 = vld [vmem:[%s612_s5 + $0x40] sm:$0xff] }
  0x25   :  { %201 = vmatpush.msrb.mxu3 %v184_v61  ;;  %v223_v15 = vld [vmem:[%s612_s5 + $0x38] sm:$0xff]  ;;  %v276_v16 = vld [vmem:[%s609_s2] ss:$0 sm:$0xff]  ;;  %v222_v17 = vld [vmem:[%s612_s5 + $0x30] sm:$0xff] }
  0x26   :  { %237 = vmatpush.msrb.mxu0 %v230_v8  ;;  %v221_v18 = vld [vmem:[%s612_s5 + $0x28] sm:$0xff]  ;;  %v220_v21 = vld [vmem:[%s612_s5 + $0x20] sm:$0xff]  ;;  %v219_v24 = vld [vmem:[%s612_s5 + $0x18] sm:$0xff] }
  0x27   :  { %202 = vmatpush.msrb.mxu3 %v183_v62  ;;  %v218_v30 = vld [vmem:[%s612_s5 + $0x10] sm:$0xff]  ;;  %v217_v31 = vld [vmem:[%s612_s5 + $0x8] sm:$0xff]  ;;  %v216_v32 = vld [vmem:[%s612_s5] sm:$0xff]  ;;  %s265_s5 = sshll.u32 %s614_s7, 4  ;;  %s266_s5 = int_to_ptr.hbm [resolvable:$true] %s265_s5 }
  0x28   :  { %238 = vmatpush.msrb.mxu0 %v229_v9  ;;  %v277_v33 = vld [vmem:[%s611_s4] ss:$0 sm:$0xff] }
  0x29   :  { %203 = vmatpush.msrb.mxu3 %v182_v63  ;;  %v278_v37 = vld [vmem:[%s613_s6] ss:$0 sm:$0xff] }
  0x2a   :  { %239 = vmatpush.msrb.mxu0 %v228_v10 }
  0x2b   :  { %204 = vmatpush.msrb.mxu3 %v181_v0 }
  0x2c   :  { %240 = vmatpush.msrb.mxu0 %v227_v11 }
  0x2d   :  { %205 = vmatpush.msrb.mxu3 %v180_v1 }
  0x2e   :  { %241 = vmatpush.msrb.mxu0 %v226_v12 }
  0x2f   :  { %206 = vmatpush.msrb.mxu3 %v179_v2 }
  0x30   :  { %242 = vmatpush.msrb.mxu0 %v225_v13 }
  0x31   :  { %207 = vmatpush.msrb.mxu3 %v178_v3 }
  0x32   :  { %243 = vmatpush.msrb.mxu0 %v224_v14 }
  0x33   :  { %208 = vmatpush.msrb.mxu3 %v177_v4 }
  0x34   :  { %244 = vmatpush.msrb.mxu0 %v223_v15 }
  0x35   :  { %209 = vmatpush.msrb.mxu3 %v176_v5 }
  0x36   :  { %245 = vmatpush.msrb.mxu0 %v222_v17 }
  0x37   :  { %210 = vmatpush.msrb.mxu3 %v175_v6 }
  0x38   :  { %246 = vmatpush.msrb.mxu0 %v221_v18 }
  0x3a   :  { %247 = vmatpush.msrb.mxu0 %v220_v21 }
  0x3c   :  { %248 = vmatpush.msrb.mxu0 %v219_v24 }
  0x3e   :  { %249 = vmatpush.msrb.mxu0 %v218_v30 }
  0x40   :  { %250 = vmatpush.msrb.mxu0 %v217_v31 }
  0x42   :  { %251 = vmatpush.msrb.mxu0 %v216_v32 }
  0x9f   :  { %v111_v19 = vpop.f32.mrf.mxu0  ;;  %v171_v26 = vpop.f32.mrf.mxu3 }
  0xa0   :  { %v112_v20 = vadd.f32 %v276_v16, %v111_v19 }
  0xa1   :  { %v131_v22 = vpop.f32.mrf.mxu1 }
  0xa2   :  { %v132_v23 = vadd.f32 %v131_v22, %v112_v20 }
  0xa5   :  { %v151_v25 = vpop.f32.mrf.mxu2 }
  0xa6   :  { %v152_v27 = vadd.f32 %v151_v25, %v132_v23 }
  0xa8   :  { %v172_v28 = vadd.f32 %v171_v26, %v152_v27 }
  0xaa   :  { %v174_v29 = vmax.f32 %v172_v28, 0.0 }
  0xac   :  { %211 = vmatmul.f32.vlgmr.msrb.gmra.mxu3 %v174_v29 }
 0x12f   :  { %v212_v34 = vpop.f32.mrf.mxu3 }
 0x130   :  { %v213_v35 = vadd.f32 %v277_v33, %v212_v34 }
 0x132   :  { %v215_v36 = vmax.f32 %v213_v35, 0.0 }
 0x134   :  { %252 = vmatmul.f32.vlgmr.msrb.gmra.mxu0 %v215_v36 }
 0x1b1   :  { %v253_v38 = vpop.f32.mrf.mxu0 }
 0x1b2   :  { %v254_v39 = vadd.f32 %v278_v37, %v253_v38 }
 0x1b4   :  { %v256_v40 = vmax.f32 %v254_v39, 0.0 }
 0x1b6   :  { %257 = vst [vmem:[#allocation2] sm:$0x3] %v256_v40 }
 0x1b7   :  { %268 = dma.vmem_to_hbm [thread:$0]  %s264_s25, 32, %s266_s5, [#allocation3]  }
 0x1b8   :  { %303 = dma.done.wait [#allocation3], 32  }
 0x1b9   :  { %304 = vsyncadd [#allocation3], 4294967264 }
 0x1ba   :  { %273 = vsyncpa [#allocation3], 1 }

// kernel: lenet_forward.4
= control target key start
LH: loop header
LB: loop body
LE: loop exit
PB: predicated region body
PF: predicated region fallthrough
CT: control target
= control target key end

     0   :  { %vm146_vm0 = vcmask 719872   ;;  %s1145_s1 = inlined_call_operand.vmem [shape: f32[216,512], index: 1, kind: input, shape index: {}]   ;;  %s1146_s0 = inlined_call_operand.vmem [shape: f32[50,216], index: 0, kind: input, shape index: {}]   ;;  %s1147_s2 = inlined_call_operand.vmem [shape: f32[1,512], index: 2, kind: input, shape index: {}]   ;;  %s1148_s3 = inlined_call_operand.vmem [shape: f32[50,128], index: 3, kind: output, shape index: {}]  }
   0x1   :  { %v89_v0 = vld [vmem:[%s1145_s1 + $0x1e8] sm:$0xff]  ;;  %v88_v1 = vld [vmem:[%s1145_s1 + $0x1e0] sm:$0xff]  ;;  %v134_v51 = vld [vmem:[%s1145_s1 + $0x350] sm:$0xff] }
   0x2   :  { %v85_v2 = vld [vmem:[%s1145_s1 + $0x1c8] sm:$0xff]  ;;  %244 = vmatpush.msra.mxu2 %v89_v0  ;;  %168 = vmatpush.msra.mxu0 %v88_v1  ;;  %v84_v3 = vld [vmem:[%s1145_s1 + $0x1c0] sm:$0xff]  ;;  %v90_v54 = vld [vmem:[%s1145_s1 + $0x1f0] sm:$0xff] }
   0x3   :  { %v81_v4 = vld [vmem:[%s1145_s1 + $0x1a8] sm:$0xff]  ;;  %v80_v5 = vld [vmem:[%s1145_s1 + $0x1a0] sm:$0xff]  ;;  %v130_v55 = vld [vmem:[%s1145_s1 + $0x330] sm:$0xff] }
   0x4   :  { %245 = vmatpush.msra.mxu2 %v85_v2  ;;  %169 = vmatpush.msra.mxu0 %v84_v3  ;;  %v133_v6 = vld [vmem:[%s1145_s1 + $0x348] sm:$0xff]  ;;  %v76_v8 = vld [vmem:[%s1145_s1 + $0x180] sm:$0xff]  ;;  %v135_v59 = vld [vmem:[%s1145_s1 + $0x358] sm:$0xff] }
   0x5   :  { %v77_v7 = vld [vmem:[%s1145_s1 + $0x188] sm:$0xff]  ;;  %287 = vmatpush.msra.mxu3 %v133_v6  ;;  %v132_v11 = vld [vmem:[%s1145_s1 + $0x340] sm:$0xff]  ;;  %v91_v60 = vld [vmem:[%s1145_s1 + $0x1f8] sm:$0xff] }
   0x6   :  { %v129_v9 = vld [vmem:[%s1145_s1 + $0x328] sm:$0xff]  ;;  %246 = vmatpush.msra.mxu2 %v81_v4  ;;  %170 = vmatpush.msra.mxu0 %v80_v5  ;;  %v72_v12 = vld [vmem:[%s1145_s1 + $0x160] sm:$0xff]  ;;  %v774_v61 = vld [vmem:[%s1146_s0 + $0x18] sm:$0xff] }
   0x7   :  { %v73_v10 = vld [vmem:[%s1145_s1 + $0x168] sm:$0xff]  ;;  %288 = vmatpush.msra.mxu3 %v129_v9  ;;  %211 = vmatpush.msra.mxu1 %v132_v11  ;;  %v128_v14 = vld [vmem:[%s1145_s1 + $0x320] sm:$0xff]  ;;  %v86_v62 = vld [vmem:[%s1145_s1 + $0x1d0] sm:$0xff] }
   0x8   :  { %v125_v13 = vld [vmem:[%s1145_s1 + $0x308] sm:$0xff]  ;;  %247 = vmatpush.msra.mxu2 %v77_v7  ;;  %171 = vmatpush.msra.mxu0 %v76_v8  ;;  %v68_v17 = vld [vmem:[%s1145_s1 + $0x140] sm:$0xff]  ;;  %v131_v63 = vld [vmem:[%s1145_s1 + $0x338] sm:$0xff] }
   0x9   :  { %v121_v15 = vld [vmem:[%s1145_s1 + $0x2e8] sm:$0xff]  ;;  %289 = vmatpush.msra.mxu3 %v125_v13  ;;  %212 = vmatpush.msra.mxu1 %v128_v14  ;;  %v124_v18 = vld [vmem:[%s1145_s1 + $0x300] sm:$0xff]  ;;  %v87_v0 = vld [vmem:[%s1145_s1 + $0x1d8] sm:$0xff] }
   0xa   :  { %v69_v16 = vld [vmem:[%s1145_s1 + $0x148] sm:$0xff]  ;;  %248 = vmatpush.msra.mxu2 %v73_v10  ;;  %172 = vmatpush.msra.mxu0 %v72_v12  ;;  %v120_v20 = vld [vmem:[%s1145_s1 + $0x2e0] sm:$0xff]  ;;  %v82_v1 = vld [vmem:[%s1145_s1 + $0x1b0] sm:$0xff] }
   0xb   :  { %v117_v19 = vld [vmem:[%s1145_s1 + $0x2c8] sm:$0xff]  ;;  %v64_v22 = vld [vmem:[%s1145_s1 + $0x120] sm:$0xff]  ;;  %290 = vmatpush.msra.mxu3 %v121_v15  ;;  %213 = vmatpush.msra.mxu1 %v124_v18  ;;  %v126_v2 = vld [vmem:[%s1145_s1 + $0x310] sm:$0xff] }
   0xc   :  { %v65_v21 = vld [vmem:[%s1145_s1 + $0x128] sm:$0xff]  ;;  %249 = vmatpush.msra.mxu2 %v69_v16  ;;  %173 = vmatpush.msra.mxu0 %v68_v17  ;;  %v116_v24 = vld [vmem:[%s1145_s1 + $0x2c0] sm:$0xff]  ;;  %v83_v3 = vld [vmem:[%s1145_s1 + $0x1b8] sm:$0xff] }
   0xd   :  { %v113_v23 = vld [vmem:[%s1145_s1 + $0x2a8] sm:$0xff]  ;;  %v60_v26 = vld [vmem:[%s1145_s1 + $0x100] sm:$0xff]  ;;  %291 = vmatpush.msra.mxu3 %v117_v19  ;;  %214 = vmatpush.msra.mxu1 %v120_v20  ;;  %v127_v4 = vld [vmem:[%s1145_s1 + $0x318] sm:$0xff] }
   0xe   :  { %v61_v25 = vld [vmem:[%s1145_s1 + $0x108] sm:$0xff]  ;;  %250 = vmatpush.msra.mxu2 %v65_v21  ;;  %174 = vmatpush.msra.mxu0 %v64_v22  ;;  %v112_v28 = vld [vmem:[%s1145_s1 + $0x2a0] sm:$0xff]  ;;  %v122_v5 = vld [vmem:[%s1145_s1 + $0x2f0] sm:$0xff] }
   0xf   :  { %v109_v27 = vld [vmem:[%s1145_s1 + $0x288] sm:$0xff]  ;;  %v56_v30 = vld [vmem:[%s1145_s1 + $0xe0] sm:$0xff]  ;;  %292 = vmatpush.msra.mxu3 %v113_v23  ;;  %215 = vmatpush.msra.mxu1 %v116_v24  ;;  %v78_v6 = vld [vmem:[%s1145_s1 + $0x190] sm:$0xff] }
  0x10   :  { %v57_v29 = vld [vmem:[%s1145_s1 + $0xe8] sm:$0xff]  ;;  %251 = vmatpush.msra.mxu2 %v61_v25  ;;  %175 = vmatpush.msra.mxu0 %v60_v26  ;;  %v108_v32 = vld [vmem:[%s1145_s1 + $0x280] sm:$0xff]  ;;  %v79_v7 = vld [vmem:[%s1145_s1 + $0x198] sm:$0xff] }
  0x11   :  { %v105_v31 = vld [vmem:[%s1145_s1 + $0x268] sm:$0xff]  ;;  %v52_v34 = vld [vmem:[%s1145_s1 + $0xc0] sm:$0xff]  ;;  %293 = vmatpush.msra.mxu3 %v109_v27  ;;  %216 = vmatpush.msra.mxu1 %v112_v28  ;;  %v813_v8 = vld [vmem:[%s1146_s0 + $0x10] sm:$0xff] }
  0x12   :  { %v53_v33 = vld [vmem:[%s1145_s1 + $0xc8] sm:$0xff]  ;;  %252 = vmatpush.msra.mxu2 %v57_v29  ;;  %176 = vmatpush.msra.mxu0 %v56_v30  ;;  %v104_v36 = vld [vmem:[%s1145_s1 + $0x260] sm:$0xff]  ;;  %v123_v9 = vld [vmem:[%s1145_s1 + $0x2f8] sm:$0xff] }
  0x13   :  { %v101_v35 = vld [vmem:[%s1145_s1 + $0x248] sm:$0xff]  ;;  %v48_v38 = vld [vmem:[%s1145_s1 + $0xa0] sm:$0xff]  ;;  %294 = vmatpush.msra.mxu3 %v105_v31  ;;  %217 = vmatpush.msra.mxu1 %v108_v32  ;;  %v74_v10 = vld [vmem:[%s1145_s1 + $0x170] sm:$0xff] }
  0x14   :  { %v49_v37 = vld [vmem:[%s1145_s1 + $0xa8] sm:$0xff]  ;;  %253 = vmatpush.msra.mxu2 %v53_v33  ;;  %177 = vmatpush.msra.mxu0 %v52_v34  ;;  %v100_v40 = vld [vmem:[%s1145_s1 + $0x240] sm:$0xff]  ;;  %v75_v12 = vld [vmem:[%s1145_s1 + $0x178] sm:$0xff] }
  0x15   :  { %v97_v39 = vld [vmem:[%s1145_s1 + $0x228] sm:$0xff]  ;;  %v44_v42 = vld [vmem:[%s1145_s1 + $0x80] sm:$0xff]  ;;  %295 = vmatpush.msra.mxu3 %v101_v35  ;;  %218 = vmatpush.msra.mxu1 %v104_v36  ;;  %v118_v13 = vld [vmem:[%s1145_s1 + $0x2d0] sm:$0xff] }
  0x16   :  { %v45_v41 = vld [vmem:[%s1145_s1 + $0x88] sm:$0xff]  ;;  %254 = vmatpush.msra.mxu2 %v49_v37  ;;  %178 = vmatpush.msra.mxu0 %v48_v38  ;;  %v96_v44 = vld [vmem:[%s1145_s1 + $0x220] sm:$0xff]  ;;  %v119_v14 = vld [vmem:[%s1145_s1 + $0x2d8] sm:$0xff] }
  0x17   :  { %v93_v43 = vld [vmem:[%s1145_s1 + $0x208] sm:$0xff]  ;;  %v40_v46 = vld [vmem:[%s1145_s1 + $0x60] sm:$0xff]  ;;  %296 = vmatpush.msra.mxu3 %v97_v39  ;;  %219 = vmatpush.msra.mxu1 %v100_v40  ;;  %v70_v15 = vld [vmem:[%s1145_s1 + $0x150] sm:$0xff] }
  0x18   :  { %v41_v45 = vld [vmem:[%s1145_s1 + $0x68] sm:$0xff]  ;;  %255 = vmatpush.msra.mxu2 %v45_v41  ;;  %179 = vmatpush.msra.mxu0 %v44_v42  ;;  %v92_v48 = vld [vmem:[%s1145_s1 + $0x200] sm:$0xff]  ;;  %v71_v16 = vld [vmem:[%s1145_s1 + $0x158] sm:$0xff] }
  0x19   :  { %v724_v47 = vld [vmem:[%s1146_s0 + $0x8] sm:$0xff]  ;;  %v36_v50 = vld [vmem:[%s1145_s1 + $0x40] sm:$0xff]  ;;  %297 = vmatpush.msra.mxu3 %v93_v43  ;;  %220 = vmatpush.msra.mxu1 %v96_v44  ;;  %v114_v17 = vld [vmem:[%s1145_s1 + $0x2b0] sm:$0xff] }
  0x1a   :  { %v37_v49 = vld [vmem:[%s1145_s1 + $0x48] sm:$0xff]  ;;  %256 = vmatpush.msra.mxu2 %v41_v45  ;;  %180 = vmatpush.msra.mxu0 %v40_v46  ;;  %v32_v53 = vld [vmem:[%s1145_s1 + $0x20] sm:$0xff]  ;;  %v115_v18 = vld [vmem:[%s1145_s1 + $0x2b8] sm:$0xff] }
  0x1b   :  { %v33_v52 = vld [vmem:[%s1145_s1 + $0x28] sm:$0xff]  ;;  %539 = vmatmul.msk.f32.vlgmr.msra.gmra.mxu3 %vm146_vm0, %v724_v47  ;;  %221 = vmatpush.msra.mxu1 %v92_v48  ;;  %v28_v57 = vld [vmem:[%s1145_s1] sm:$0xff]  ;;  %v67_v19 = vld [vmem:[%s1145_s1 + $0x138] sm:$0xff] }
  0x1c   :  { %257 = vmatpush.msra.mxu2 %v37_v49  ;;  %181 = vmatpush.msra.mxu0 %v36_v50  ;;  %v29_v56 = vld [vmem:[%s1145_s1 + $0x8] sm:$0xff]  ;;  %v763_v58 = vld [vmem:[%s1146_s0] sm:$0xff]  ;;  %v66_v20 = vld [vmem:[%s1145_s1 + $0x130] sm:$0xff] }
  0x1d   :  { %363 = vmatpush.msrb.mxu3 %v134_v51  ;;  %532 = vmatmul.msk.f32.vlgmr.msra.gmra.mxu1 %vm146_vm0, %v724_v47  ;;  %v826_v11 = vld [vmem:[%s1146_s0 + $0x28] sm:$0xff]  ;;  %v110_v21 = vld [vmem:[%s1145_s1 + $0x290] sm:$0xff]  ;;  %v865_v22 = vld [vmem:[%s1146_s0 + $0x20] sm:$0xff] }
  0x1e   :  { %258 = vmatpush.msra.mxu2 %v33_v52  ;;  %182 = vmatpush.msra.mxu0 %v32_v53  ;;  %v62_v23 = vld [vmem:[%s1145_s1 + $0x110] sm:$0xff]  ;;  %v63_v24 = vld [vmem:[%s1145_s1 + $0x118] sm:$0xff]  ;;  %v930_v39 = vld [vmem:[%s1146_s0 + $0x48] sm:$0xff] }
  0x1f   :  { %320 = vmatpush.msrb.mxu1 %v90_v54  ;;  %364 = vmatpush.msrb.mxu3 %v130_v55  ;;  %v878_v25 = vld [vmem:[%s1146_s0 + $0x38] sm:$0xff]  ;;  %v58_v27 = vld [vmem:[%s1145_s1 + $0xf0] sm:$0xff]  ;;  %v22_v51 = vld [vmem:[%s1146_s0 + $0x40] sm:$0xff] }
  0x20   :  { %259 = vmatpush.msra.mxu2 %v29_v56  ;;  %183 = vmatpush.msra.mxu0 %v28_v57  ;;  %v111_v26 = vld [vmem:[%s1145_s1 + $0x298] sm:$0xff]  ;;  %v106_v29 = vld [vmem:[%s1145_s1 + $0x270] sm:$0xff]  ;;  %v27_v57 = vld [vmem:[%s1146_s0 + $0x68] sm:$0x3] }
  0x21   :  { %260 = vmatmul.f32.vlgmr.msra.gmra.mxu2 %v763_v58  ;;  %184 = vmatmul.f32.vlgmr.msra.gmra.mxu0 %v763_v58  ;;  %v59_v28 = vld [vmem:[%s1145_s1 + $0xf8] sm:$0xff]  ;;  %v54_v31 = vld [vmem:[%s1145_s1 + $0xd0] sm:$0xff] }
  0x22   :  { %439 = vmatpush.msrb.mxu2 %v135_v59  ;;  %396 = vmatpush.msrb.mxu0 %v91_v60  ;;  %v107_v30 = vld [vmem:[%s1145_s1 + $0x278] sm:$0xff]  ;;  %v102_v33 = vld [vmem:[%s1145_s1 + $0x250] sm:$0xff]  ;;  %v26_v59 = vld [vmem:[%s1146_s0 + $0x60] sm:$0x3] }
  0x23   :  { %540 = vmatmul.msk.f32.gmra.mxu3 %vm146_vm0, %v774_v61  ;;  %321 = vmatpush.msrb.mxu1 %v86_v62  ;;  %v55_v32 = vld [vmem:[%s1145_s1 + $0xd8] sm:$0xff]  ;;  %v50_v34 = vld [vmem:[%s1145_s1 + $0xb0] sm:$0xff] }
  0x24   :  { %440 = vmatpush.msrb.mxu2 %v131_v63  ;;  %397 = vmatpush.msrb.mxu0 %v87_v0  ;;  %v51_v35 = vld [vmem:[%s1145_s1 + $0xb8] sm:$0xff]  ;;  %v917_v36 = vld [vmem:[%s1146_s0 + $0x30] sm:$0xff] }
  0x25   :  { %322 = vmatpush.msrb.mxu1 %v82_v1  ;;  %365 = vmatpush.msrb.mxu3 %v126_v2  ;;  %v103_v37 = vld [vmem:[%s1145_s1 + $0x258] sm:$0xff]  ;;  %v46_v38 = vld [vmem:[%s1145_s1 + $0x90] sm:$0xff] }
  0x26   :  { %398 = vmatpush.msrb.mxu0 %v83_v3  ;;  %441 = vmatpush.msrb.mxu2 %v127_v4  ;;  %v47_v40 = vld [vmem:[%s1145_s1 + $0x98] sm:$0xff]  ;;  %v42_v41 = vld [vmem:[%s1145_s1 + $0x70] sm:$0xff] }
  0x27   :  { %533 = vmatmul.msk.f32.gmra.mxu1 %vm146_vm0, %v774_v61  ;;  %366 = vmatpush.msrb.mxu3 %v122_v5  ;;  %v98_v42 = vld [vmem:[%s1145_s1 + $0x230] sm:$0xff]  ;;  %v43_v43 = vld [vmem:[%s1145_s1 + $0x78] sm:$0xff] }
  0x28   :  { %323 = vmatpush.msrb.mxu1 %v78_v6  ;;  %399 = vmatpush.msrb.mxu0 %v79_v7  ;;  %v99_v44 = vld [vmem:[%s1145_s1 + $0x238] sm:$0xff]  ;;  %v38_v45 = vld [vmem:[%s1145_s1 + $0x50] sm:$0xff] }
  0x29   :  { %263 = vmatmul.f32.gmra.mxu2 %v813_v8  ;;  %187 = vmatmul.f32.gmra.mxu0 %v813_v8  ;;  %v94_v46 = vld [vmem:[%s1145_s1 + $0x210] sm:$0xff]  ;;  %v39_v48 = vld [vmem:[%s1145_s1 + $0x58] sm:$0xff] }
  0x2a   :  { %442 = vmatpush.msrb.mxu2 %v123_v9  ;;  %324 = vmatpush.msrb.mxu1 %v74_v10  ;;  %v95_v49 = vld [vmem:[%s1145_s1 + $0x218] sm:$0xff]  ;;  %v34_v50 = vld [vmem:[%s1145_s1 + $0x30] sm:$0xff] }
  0x2b   :  { %541 = vmatmul.msk.f32.gmra.mxu3 %vm146_vm0, %v826_v11  ;;  %400 = vmatpush.msrb.mxu0 %v75_v12  ;;  %v35_v52 = vld [vmem:[%s1145_s1 + $0x38] sm:$0xff]  ;;  %v30_v53 = vld [vmem:[%s1145_s1 + $0x10] sm:$0xff] }
  0x2c   :  { %367 = vmatpush.msrb.mxu3 %v118_v13  ;;  %443 = vmatpush.msrb.mxu2 %v119_v14  ;;  %v25_v54 = vld [vmem:[%s1146_s0 + $0x58] sm:$0xff]  ;;  %v24_v56 = vld [vmem:[%s1146_s0 + $0x50] sm:$0xff] }
  0x2d   :  { %325 = vmatpush.msrb.mxu1 %v70_v15  ;;  %401 = vmatpush.msrb.mxu0 %v71_v16  ;;  %v31_v55 = vld [vmem:[%s1145_s1 + $0x18] sm:$0xff] }
  0x2e   :  { %368 = vmatpush.msrb.mxu3 %v114_v17  ;;  %444 = vmatpush.msrb.mxu2 %v115_v18 }
  0x2f   :  { %534 = vmatmul.msk.f32.gmra.mxu1 %vm146_vm0, %v826_v11  ;;  %402 = vmatpush.msrb.mxu0 %v67_v19 }
  0x30   :  { %326 = vmatpush.msrb.mxu1 %v66_v20  ;;  %369 = vmatpush.msrb.mxu3 %v110_v21  ;;  %v136_v21 = vld [vmem:[%s1147_s2] sm:$0xf] }
  0x31   :  { %266 = vmatmul.f32.gmra.mxu2 %v865_v22  ;;  %190 = vmatmul.f32.gmra.mxu0 %v865_v22 }
  0x32   :  { %327 = vmatpush.msrb.mxu1 %v62_v23  ;;  %403 = vmatpush.msrb.mxu0 %v63_v24  ;;  %v1069_v23 = vperm.slane %v136_v21, 2  ;;  %v1071_v24 = vperm.slane %v136_v21, 0 }
  0x33   :  { %542 = vmatmul.msk.f32.gmra.mxu3 %vm146_vm0, %v878_v25  ;;  %445 = vmatpush.msrb.mxu2 %v111_v26 }
  0x34   :  { %328 = vmatpush.msrb.mxu1 %v58_v27  ;;  %404 = vmatpush.msrb.mxu0 %v59_v28 }
  0x35   :  { %370 = vmatpush.msrb.mxu3 %v106_v29  ;;  %446 = vmatpush.msrb.mxu2 %v107_v30  ;;  %v1077_v29 = vperm.slane %v136_v21, 3 }
  0x36   :  { %329 = vmatpush.msrb.mxu1 %v54_v31  ;;  %405 = vmatpush.msrb.mxu0 %v55_v32 }
  0x37   :  { %535 = vmatmul.msk.f32.gmra.mxu1 %vm146_vm0, %v878_v25  ;;  %371 = vmatpush.msrb.mxu3 %v102_v33 }
  0x38   :  { %330 = vmatpush.msrb.mxu1 %v50_v34  ;;  %406 = vmatpush.msrb.mxu0 %v51_v35 }
  0x39   :  { %269 = vmatmul.f32.gmra.mxu2 %v917_v36  ;;  %193 = vmatmul.f32.gmra.mxu0 %v917_v36 }
  0x3a   :  { %447 = vmatpush.msrb.mxu2 %v103_v37  ;;  %331 = vmatpush.msrb.mxu1 %v46_v38 }
  0x3b   :  { %543 = vmatmul.msk.f32.gmra.mxu3 %vm146_vm0, %v930_v39  ;;  %407 = vmatpush.msrb.mxu0 %v47_v40 }
  0x3c   :  { %332 = vmatpush.msrb.mxu1 %v42_v41  ;;  %372 = vmatpush.msrb.mxu3 %v98_v42 }
  0x3d   :  { %408 = vmatpush.msrb.mxu0 %v43_v43  ;;  %448 = vmatpush.msrb.mxu2 %v99_v44 }
  0x3e   :  { %333 = vmatpush.msrb.mxu1 %v38_v45  ;;  %373 = vmatpush.msrb.mxu3 %v94_v46 }
  0x3f   :  { %536 = vmatmul.msk.f32.gmra.mxu1 %vm146_vm0, %v930_v39  ;;  %409 = vmatpush.msrb.mxu0 %v39_v48 }
  0x40   :  { %449 = vmatpush.msrb.mxu2 %v95_v49  ;;  %334 = vmatpush.msrb.mxu1 %v34_v50 }
  0x41   :  { %272 = vmatmul.f32.gmra.mxu2 %v22_v51  ;;  %196 = vmatmul.f32.gmra.mxu0 %v22_v51 }
  0x42   :  { %410 = vmatpush.msrb.mxu0 %v35_v52  ;;  %335 = vmatpush.msrb.mxu1 %v30_v53 }
  0x43   :  { %544 = vmatmul.msk.f32.gmra.mxu3 %vm146_vm0, %v25_v54 }
  0x44   :  { %411 = vmatpush.msrb.mxu0 %v31_v55 }
  0x47   :  { %537 = vmatmul.msk.f32.gmra.mxu1 %vm146_vm0, %v25_v54 }
  0x49   :  { %275 = vmatmul.f32.gmra.mxu2 %v24_v56  ;;  %199 = vmatmul.f32.gmra.mxu0 %v24_v56 }
  0x4b   :  { %545 = vmatmul.msk.f32.gmra.mxu3 %vm146_vm0, %v27_v57 }
  0x4f   :  { %538 = vmatmul.msk.f32.gmra.mxu1 %vm146_vm0, %v27_v57 }
  0x51   :  { %278 = vmatmul.f32.gmra.mxu2 %v26_v59  ;;  %202 = vmatmul.f32.gmra.mxu0 %v26_v59 }
  0x53   :  { %546 = vmatmul.msk.f32.vlgmr.msrb.gmra.mxu3 %vm146_vm0, %v724_v47 }
  0x57   :  { %336 = vmatmul.f32.vlgmr.msrb.gmra.mxu1 %v763_v58 }
  0x59   :  { %553 = vmatmul.msk.f32.vlgmr.msrb.gmra.mxu2 %vm146_vm0, %v724_v47  ;;  %412 = vmatmul.f32.vlgmr.msrb.gmra.mxu0 %v763_v58 }
  0x5b   :  { %547 = vmatmul.msk.f32.gmra.mxu3 %vm146_vm0, %v774_v61 }
  0x5f   :  { %339 = vmatmul.f32.gmra.mxu1 %v813_v8 }
  0x61   :  { %554 = vmatmul.msk.f32.gmra.mxu2 %vm146_vm0, %v774_v61  ;;  %415 = vmatmul.f32.gmra.mxu0 %v813_v8 }
  0x63   :  { %548 = vmatmul.msk.f32.gmra.mxu3 %vm146_vm0, %v826_v11 }
  0x67   :  { %342 = vmatmul.f32.gmra.mxu1 %v865_v22 }
  0x69   :  { %555 = vmatmul.msk.f32.gmra.mxu2 %vm146_vm0, %v826_v11  ;;  %418 = vmatmul.f32.gmra.mxu0 %v865_v22  ;;  %v1067_v22 = vperm.slane %v136_v21, 1 }
  0x6b   :  { %549 = vmatmul.msk.f32.gmra.mxu3 %vm146_vm0, %v878_v25 }
  0x6f   :  { %345 = vmatmul.f32.gmra.mxu1 %v917_v36 }
  0x71   :  { %556 = vmatmul.msk.f32.gmra.mxu2 %vm146_vm0, %v878_v25  ;;  %421 = vmatmul.f32.gmra.mxu0 %v917_v36 }
  0x73   :  { %550 = vmatmul.msk.f32.gmra.mxu3 %vm146_vm0, %v930_v39 }
  0x77   :  { %348 = vmatmul.f32.gmra.mxu1 %v22_v51 }
  0x79   :  { %557 = vmatmul.msk.f32.gmra.mxu2 %vm146_vm0, %v930_v39  ;;  %424 = vmatmul.f32.gmra.mxu0 %v22_v51 }
  0x7b   :  { %551 = vmatmul.msk.f32.gmra.mxu3 %vm146_vm0, %v25_v54 }
  0x7f   :  { %351 = vmatmul.f32.gmra.mxu1 %v24_v56 }
  0x81   :  { %558 = vmatmul.msk.f32.gmra.mxu2 %vm146_vm0, %v25_v54  ;;  %427 = vmatmul.f32.gmra.mxu0 %v24_v56 }
  0x83   :  { %552 = vmatmul.msk.f32.gmra.mxu3 %vm146_vm0, %v27_v57 }
  0x87   :  { %354 = vmatmul.f32.gmra.mxu1 %v26_v59 }
  0x89   :  { %559 = vmatmul.msk.f32.gmra.mxu2 %vm146_vm0, %v27_v57  ;;  %430 = vmatmul.f32.gmra.mxu0 %v26_v59 }
  0x9a   :  { %v223_v47 = vpop.f32.mrf.mxu1 }
  0x9e   :  { %v185_v58 = vpop.f32.mrf.mxu0  ;;  %v299_v60 = vpop.f32.mrf.mxu3 }
  0x9f   :  { %v186_v32 = vadd.f32 %v185_v58, %v1071_v24 }
  0xa1   :  { %v224_v36 = vadd.f32 %v223_v47, %v186_v32 }
  0xa3   :  { %v472_v48 = vmax.f32 %v224_v36, 0.0 }
  0xa4   :  { %v261_v61 = vpop.f32.mrf.mxu2  ;;  %v226_v62 = vpop.f32.mrf.mxu1 }
  0xa5   :  { %v262_v27 = vadd.f32 %v261_v61, %v1067_v22 }
  0xa6   :  { %v188_v63 = vpop.f32.mrf.mxu0  ;;  %v302_v0 = vpop.f32.mrf.mxu3 }
  0xa7   :  { %v300_v33 = vadd.f32 %v299_v60, %v262_v27  ;;  %v189_v44 = vadd.f32 %v188_v63, %v1071_v24 }
  0xa9   :  { %v473_v40 = vmax.f32 %v300_v33, 0.0  ;;  %v227_v55 = vadd.f32 %v226_v62, %v189_v44 }
  0xab   :  { %v500_v51 = vmax.f32 %v472_v48, %v473_v40 }
  0xac   :  { %v264_v1 = vpop.f32.mrf.mxu2  ;;  %v1028_v2 = vpop.f32.mrf.mxu1 }
  0xad   :  { %v265_v37 = vadd.f32 %v264_v1, %v1067_v22 }
  0xae   :  { %v1030_v3 = vpop.f32.mrf.mxu0  ;;  %v1032_v4 = vpop.f32.mrf.mxu3 }
  0xaf   :  { %v303_v50 = vadd.f32 %v302_v0, %v265_v37  ;;  %v476_v0 = vmax.f32 %v227_v55, 0.0  ;;  %v192_v62 = vadd.f32 %v1030_v3, %v1071_v24 }
  0xb1   :  { %v477_v57 = vmax.f32 %v303_v50, 0.0  ;;  %v230_v32 = vadd.f32 %v1028_v2, %v192_v62 }
  0xb3   :  { %v501_v27 = vmax.f32 %v476_v0, %v477_v57 }
  0xb4   :  { %v267_v5 = vpop.f32.mrf.mxu2  ;;  %v1034_v6 = vpop.f32.mrf.mxu1 }
  0xb5   :  { %v268_v58 = vadd.f32 %v267_v5, %v1067_v22 }
  0xb6   :  { %v1036_v7 = vpop.f32.mrf.mxu0  ;;  %v1038_v8 = vpop.f32.mrf.mxu3 }
  0xbc   :  { %v1040_v9 = vpop.f32.mrf.mxu2  ;;  %v1042_v10 = vpop.f32.mrf.mxu1 }
  0xbe   :  { %v1044_v11 = vpop.f32.mrf.mxu0  ;;  %v1046_v12 = vpop.f32.mrf.mxu3 }
  0xc4   :  { %v1048_v13 = vpop.f32.mrf.mxu2  ;;  %v1050_v14 = vpop.f32.mrf.mxu1 }
  0xc6   :  { %v1052_v15 = vpop.f32.mrf.mxu0  ;;  %v1054_v16 = vpop.f32.mrf.mxu3 }
  0xcc   :  { %v1056_v17 = vpop.f32.mrf.mxu2  ;;  %v1058_v18 = vpop.f32.mrf.mxu1 }
  0xce   :  { %v1060_v19 = vpop.f32.mrf.mxu0  ;;  %v1062_v20 = vpop.f32.mrf.mxu3 }
  0xd4   :  { %v1073_v25 = vpop.f32.mrf.mxu2  ;;  %v337_v26 = vpop.f32.mrf.mxu1 }
  0xd5   :  { %v338_v28 = vadd.f32 %v337_v26, %v1069_v23 }
  0xd6   :  { %v413_v30 = vpop.f32.mrf.mxu0  ;;  %v375_v31 = vpop.f32.mrf.mxu3 }
  0xd7   :  { %v414_v34 = vadd.f32 %v413_v30, %v1077_v29  ;;  %v376_v35 = vadd.f32 %v375_v31, %v338_v28  ;;  %v306_v28 = vadd.f32 %v1032_v4, %v268_v58 }
  0xd9   :  { %v474_v41 = vmax.f32 %v376_v35, 0.0  ;;  %v481_v37 = vmax.f32 %v306_v28, 0.0  ;;  %v201_v28 = vadd.f32 %v1052_v15, %v1071_v24  ;;  %v280_v15 = vadd.f32 %v1073_v25, %v1067_v22 }
  0xdc   :  { %v451_v38 = vpop.f32.mrf.mxu2  ;;  %v340_v39 = vpop.f32.mrf.mxu1 }
  0xdd   :  { %v452_v42 = vadd.f32 %v451_v38, %v414_v34  ;;  %v341_v43 = vadd.f32 %v340_v39, %v1069_v23  ;;  %v271_v34 = vadd.f32 %v1040_v9, %v1067_v22  ;;  %v195_v39 = vadd.f32 %v1036_v7, %v1071_v24 }
  0xde   :  { %v416_v45 = vpop.f32.mrf.mxu0  ;;  %v378_v46 = vpop.f32.mrf.mxu3  ;;  %v274_v7 = vadd.f32 %v1048_v13, %v1067_v22 }
  0xdf   :  { %v475_v49 = vmax.f32 %v452_v42, 0.0  ;;  %v417_v53 = vadd.f32 %v416_v45, %v1077_v29  ;;  %v379_v54 = vadd.f32 %v378_v46, %v341_v43  ;;  %v309_v9 = vadd.f32 %v1038_v8, %v271_v34 }
  0xe0   :  { %v233_v48 = vadd.f32 %v1034_v6, %v195_v39  ;;  %v198_v6 = vadd.f32 %v1044_v11, %v1071_v24  ;;  %v312_v58 = vadd.f32 %v1046_v12, %v274_v7 }
  0xe1   :  { %v507_v52 = vmax.f32 %v474_v41, %v475_v49  ;;  %v478_v60 = vmax.f32 %v379_v54, 0.0  ;;  %v480_v41 = vmax.f32 %v230_v32, 0.0  ;;  %v485_v50 = vmax.f32 %v309_v9, 0.0 }
  0xe2   :  { %v484_v55 = vmax.f32 %v233_v48, 0.0 }
  0xe3   :  { %v514_v56 = vmax.f32 %v500_v51, %v507_v52  ;;  %v502_v43 = vmax.f32 %v480_v41, %v481_v37 }
  0xe4   :  { %v454_v59 = vpop.f32.mrf.mxu2  ;;  %v343_v47 = vpop.f32.mrf.mxu1 }
  0xe5   :  { %521 = vst [vmem:[%s1148_s3] sm:$0xff] %v514_v56  ;;  %v455_v61 = vadd.f32 %v454_v59, %v417_v53  ;;  %v344_v63 = vadd.f32 %v343_v47, %v1069_v23  ;;  %v503_v47 = vmax.f32 %v484_v55, %v485_v50 }
  0xe6   :  { %v419_v1 = vpop.f32.mrf.mxu0  ;;  %v381_v21 = vpop.f32.mrf.mxu3 }
  0xe7   :  { %v479_v26 = vmax.f32 %v455_v61, 0.0  ;;  %v420_v5 = vadd.f32 %v419_v1, %v1077_v29  ;;  %v382_v31 = vadd.f32 %v381_v21, %v344_v63  ;;  %v236_v63 = vadd.f32 %v1042_v10, %v198_v6 }
  0xe8   :  { %v277_v1 = vadd.f32 %v1056_v17, %v1067_v22 }
  0xe9   :  { %v508_v30 = vmax.f32 %v478_v60, %v479_v26  ;;  %v482_v3 = vmax.f32 %v382_v31, 0.0  ;;  %v489_v26 = vmax.f32 %v312_v58, 0.0 }
  0xea   :  { %v315_v17 = vadd.f32 %v1054_v16, %v277_v1 }
  0xeb   :  { %v515_v33 = vmax.f32 %v501_v27, %v508_v30 }
  0xec   :  { %v457_v35 = vpop.f32.mrf.mxu2  ;;  %v346_v36 = vpop.f32.mrf.mxu1 }
  0xed   :  { %522 = vst [vmem:[%s1148_s3 + $0x8] sm:$0xff] %v515_v33  ;;  %v458_v38 = vadd.f32 %v457_v35, %v420_v5  ;;  %v347_v4 = vadd.f32 %v346_v36, %v1069_v23  ;;  %v488_v5 = vmax.f32 %v236_v63, 0.0  ;;  %v239_v36 = vadd.f32 %v1050_v14, %v201_v28 }
  0xee   :  { %v422_v40 = vpop.f32.mrf.mxu0  ;;  %v384_v2 = vpop.f32.mrf.mxu3  ;;  %v204_v14 = vadd.f32 %v1060_v19, %v1071_v24 }
  0xef   :  { %v483_v42 = vmax.f32 %v458_v38, 0.0  ;;  %v423_v45 = vadd.f32 %v422_v40, %v1077_v29  ;;  %v385_v46 = vadd.f32 %v384_v2, %v347_v4  ;;  %v504_v32 = vmax.f32 %v488_v5, %v489_v26 }
  0xf0   :  { %v492_v2 = vmax.f32 %v239_v36, 0.0 }
  0xf1   :  { %v509_v44 = vmax.f32 %v482_v3, %v483_v42  ;;  %v486_v53 = vmax.f32 %v385_v46, 0.0  ;;  %v493_v3 = vmax.f32 %v315_v17, 0.0  ;;  %v242_v46 = vadd.f32 %v1058_v18, %v204_v14 }
  0xf3   :  { %v516_v49 = vmax.f32 %v502_v43, %v509_v44  ;;  %v505_v43 = vmax.f32 %v492_v2, %v493_v3  ;;  %v318_v44 = vadd.f32 %v1062_v20, %v280_v15  ;;  %v496_v19 = vmax.f32 %v242_v46, 0.0 }
  0xf4   :  { %v460_v51 = vpop.f32.mrf.mxu2  ;;  %v349_v52 = vpop.f32.mrf.mxu1 }
  0xf5   :  { %523 = vst [vmem:[%s1148_s3 + $0x10] sm:$0xff] %v516_v49  ;;  %v461_v8 = vadd.f32 %v460_v51, %v423_v45  ;;  %v350_v54 = vadd.f32 %v349_v52, %v1069_v23  ;;  %v497_v50 = vmax.f32 %v318_v44, 0.0 }
  0xf6   :  { %v425_v56 = vpop.f32.mrf.mxu0  ;;  %v387_v57 = vpop.f32.mrf.mxu3 }
  0xf7   :  { %v487_v59 = vmax.f32 %v461_v8, 0.0  ;;  %v426_v13 = vadd.f32 %v425_v56, %v1077_v29  ;;  %v388_v61 = vadd.f32 %v387_v57, %v350_v54  ;;  %v506_v52 = vmax.f32 %v496_v19, %v497_v50 }
  0xf9   :  { %v510_v60 = vmax.f32 %v486_v53, %v487_v59  ;;  %v490_v11 = vmax.f32 %v388_v61, 0.0 }
  0xfb   :  { %v517_v0 = vmax.f32 %v503_v47, %v510_v60 }
  0xfc   :  { %v463_v21 = vpop.f32.mrf.mxu2  ;;  %v352_v62 = vpop.f32.mrf.mxu1 }
  0xfd   :  { %524 = vst [vmem:[%s1148_s3 + $0x18] sm:$0xff] %v517_v0  ;;  %v464_v27 = vadd.f32 %v463_v21, %v426_v13  ;;  %v353_v12 = vadd.f32 %v352_v62, %v1069_v23 }
  0xfe   :  { %v428_v30 = vpop.f32.mrf.mxu0  ;;  %v390_v10 = vpop.f32.mrf.mxu3 }
  0xff   :  { %v491_v31 = vmax.f32 %v464_v27, 0.0  ;;  %v429_v34 = vadd.f32 %v428_v30, %v1077_v29  ;;  %v391_v35 = vadd.f32 %v390_v10, %v353_v12 }
 0x101   :  { %v511_v33 = vmax.f32 %v490_v11, %v491_v31  ;;  %v494_v39 = vmax.f32 %v391_v35, 0.0 }
 0x103   :  { %v518_v37 = vmax.f32 %v504_v32, %v511_v33 }
 0x104   :  { %v466_v38 = vpop.f32.mrf.mxu2  ;;  %v355_v4 = vpop.f32.mrf.mxu1 }
 0x105   :  { %525 = vst [vmem:[%s1148_s3 + $0x20] sm:$0xff] %v518_v37  ;;  %v467_v16 = vadd.f32 %v466_v38, %v429_v34  ;;  %v356_v40 = vadd.f32 %v355_v4, %v1069_v23 }
 0x106   :  { %v431_v41 = vpop.f32.mrf.mxu0  ;;  %v393_v42 = vpop.f32.mrf.mxu3 }
 0x107   :  { %v495_v9 = vmax.f32 %v467_v16, 0.0  ;;  %v432_v22 = vadd.f32 %v431_v41, %v1077_v29  ;;  %v394_v25 = vadd.f32 %v393_v42, %v356_v40 }
 0x109   :  { %v512_v45 = vmax.f32 %v494_v39, %v495_v9  ;;  %v498_v23 = vmax.f32 %v394_v25, 0.0 }
 0x10b   :  { %v519_v48 = vmax.f32 %v505_v43, %v512_v45 }
 0x10c   :  { %v469_v49 = vpop.f32.mrf.mxu2 }
 0x10d   :  { %526 = vst [vmem:[%s1148_s3 + $0x28] sm:$0xff] %v519_v48  ;;  %v470_v51 = vadd.f32 %v469_v49, %v432_v22 }
 0x10f   :  { %v499_v24 = vmax.f32 %v470_v51, 0.0 }
 0x111   :  { %v513_v7 = vmax.f32 %v498_v23, %v499_v24 }
 0x113   :  { %v520_v20 = vmax.f32 %v506_v52, %v513_v7 }
 0x115   :  { %527 = vst [vmem:[%s1148_s3 + $0x30] sm:$0x3] %v520_v20 }

</bundles_post_ra>
